<compile_context>
chip_gen: v6e
topology: v6e:2x2x1
jax: 0.10.0
libtpu: 0.0.40
codegen_flags: <defaults>
</compile_context>

<pallas_src>
import functools

import jax
import jax.numpy as jnp
from jax.experimental import pallas as pl
from jax.experimental.pallas import tpu as pltpu

# Layer sizes from the PyTorch module
SIZES = [13, 96, 96, 64, 64, 32, 2]


def _round_up(a, b):
    return (a + b - 1) // b * b


def _num_tensorcores():
    """Best-effort TensorCores-per-chip (megacore chips -> 2). Heuristic only;
    affects tiling choice, never correctness."""
    try:
        kind = jax.devices()[0].device_kind.lower()
    except Exception:  # noqa: BLE001 - hardware query heuristic only
        return 1
    if "lite" in kind or "v5e" in kind or "v6e" in kind:
        return 1
    if "v4" in kind or "v5p" in kind or "v7" in kind or "7x" in kind:
        return 2
    return 1


@functools.lru_cache(maxsize=1)
def _single_buffer_supported():
    """One-time feature probe: does this jax/Mosaic accept
    BlockSpec(pipeline_mode=pl.Buffered(1)) for grid-invariant operands?
    The broad except is confined to this tiny probe so it cannot mask
    tracing/lowering bugs in the real kernel."""
    if not hasattr(pl, "Buffered"):
        return False

    def _probe_kernel(a_ref, o_ref):
        o_ref[...] = a_ref[...] + 1.0

    try:
        spec = pl.BlockSpec((8, 128), lambda i: (0, 0),
                            pipeline_mode=pl.Buffered(1))
        probe = pl.pallas_call(
            _probe_kernel,
            out_shape=jax.ShapeDtypeStruct((8, 128), jnp.float32),
            grid_spec=pltpu.PrefetchScalarGridSpec(
                num_scalar_prefetch=0,
                grid=(1,),
                in_specs=[spec],
                out_specs=pl.BlockSpec((8, 128), lambda i: (0, 0)),
            ),
        )
        jax.block_until_ready(probe(jnp.zeros((8, 128), jnp.float32)))
        return True
    except Exception:  # noqa: BLE001 - narrowly-scoped capability probe
        return False


def cnet_kernel(x_ref,
                w1_ref, b1_ref,
                w2_ref, b2_ref,
                w3_ref, b3_ref,
                w4_ref, b4_ref,
                w5_ref, b5_ref,
                w6_ref, b6_ref,
                o_ref):
    """Fused forward pass for one batch tile, entirely in VMEM.

    bf16 x bf16 MXU matmuls with f32 accumulation; bias add + ReLU in f32 on
    the VPU; activations cast back to bf16 between layers.  The final layer is
    computed at its true width (2) and stored directly -- only 8 bytes/row of
    output traffic.
    """
    # In-kernel cast to bf16 (VPU has huge slack; avoids a wrapper-side HBM pass).
    h = x_ref[...].astype(jnp.bfloat16)

    def linear(h, w_ref, b_ref):
        # MXU: bf16 inputs, f32 accumulation; bias added in f32.
        return jnp.dot(h, w_ref[...], preferred_element_type=jnp.float32) + b_ref[...]

    def linear_relu(h, w_ref, b_ref):
        z = jnp.maximum(linear(h, w_ref, b_ref), 0.0)  # ReLU in f32
        return z.astype(jnp.bfloat16)                  # bf16 for the next MXU push

    h = linear_relu(h, w1_ref, b1_ref)
    h = linear_relu(h, w2_ref, b2_ref)
    h = linear_relu(h, w3_ref, b3_ref)
    h = linear_relu(h, w4_ref, b4_ref)
    h = linear_relu(h, w5_ref, b5_ref)
    # Final layer: no ReLU; narrow (tile, 2) f32 store.
    o_ref[...] = linear(h, w6_ref, b6_ref).astype(o_ref.dtype)


def init_params(key):
    """Deterministic init mimicking nn.Linear default (uniform +-1/sqrt(fan_in)).
    Weights are returned already transposed to (in, out), in float32."""
    params = []
    for i in range(6):
        fan_in, fan_out = SIZES[i], SIZES[i + 1]
        key, kw, kb = jax.random.split(key, 3)
        bound = 1.0 / (fan_in ** 0.5)
        w = jax.random.uniform(kw, (fan_in, fan_out), jnp.float32, -bound, bound)
        b = jax.random.uniform(kb, (1, fan_out), jnp.float32, -bound, bound)
        params.append((w, b))
    return params


def cnet_forward(x, params, *, batch_tile=None, max_tile=2048):
    n, f = x.shape
    assert f == SIZES[0], "expected 13 input features"
    num_cores = _num_tensorcores()

    # --- Batch tiling heuristic -------------------------------------------
    # Single-TC chips (v5e/v6e): one full-batch tile whenever it fits (extra
    # grid steps are pure overhead).  2-TC chips (v4/v5p/v7x): split into an
    # even number of equal tiles when there is enough work so both cores get
    # the same load.  Large batches tile at max_tile (VMEM is nowhere near a
    # constraint; bigger M per step is the only compute lever here).
    if batch_tile is None:
        steps = pl.cdiv(n, max_tile)
        if num_cores > 1 and (steps > 1 or n >= 1024):
            steps = _round_up(steps, num_cores)
        if steps == 1:
            batch_tile = n  # block == full array dim -> no (8,) divisibility need
        else:
            batch_tile = _round_up(pl.cdiv(n, steps), 8)
    else:
        batch_tile = n if batch_tile >= n else max(8, _round_up(batch_tile, 8))

    # Pad the batch only when tiling requires it (common small-batch case: none).
    n_pad = n if batch_tile == n else _round_up(n, batch_tile)
    x_in = x if n_pad == n else jnp.pad(x, ((0, n_pad - n), (0, 0)))

    # bf16 weights (MXU-native); f32 biases (added to the f32 accumulator).
    # No output-lane padding: the final layer stays 2 wide.
    flat_params = []
    for w, b in params:
        flat_params.append(w.astype(jnp.bfloat16))
        flat_params.append(b.astype(jnp.float32))

    grid = (n_pad // batch_tile,)

    # Advisory cost estimate reflecting real traffic (unpadded output).
    flops = 2 * n_pad * sum(SIZES[i] * SIZES[i + 1] for i in range(6))
    bytes_accessed = (x_in.size * x_in.dtype.itemsize
                      + sum(a.size * a.dtype.itemsize for a in flat_params)
                      + n_pad * SIZES[-1] * 4)
    cost = pl.CostEstimate(flops=flops, transcendentals=0,
                           bytes_accessed=bytes_accessed)

    # Grid-invariant weights/biases: single-buffer them when supported
    # (saves double-buffer VMEM + prologue DMA descriptors).
    weight_kwargs = (
        {"pipeline_mode": pl.Buffered(1)} if _single_buffer_supported() else {}
    )

    in_specs = [pl.BlockSpec((batch_tile, SIZES[0]), lambda i: (i, 0))]
    for arr in flat_params:
        in_specs.append(pl.BlockSpec(arr.shape, lambda i: (0, 0), **weight_kwargs))
    out_specs = pl.BlockSpec((batch_tile, SIZES[-1]), lambda i: (i, 0))

    y = pl.pallas_call(
        cnet_kernel,
        out_shape=jax.ShapeDtypeStruct((n_pad, SIZES[-1]), jnp.float32),
        grid_spec=pltpu.PrefetchScalarGridSpec(
            num_scalar_prefetch=0,
            grid=grid,
            in_specs=in_specs,
            out_specs=out_specs,
        ),
        compiler_params=pltpu.CompilerParams(
            # TODO(synk): on v7x, verify "parallel" shards the batch axis across
            # both TensorCores; if not, switch to pltpu.CORE_PARALLEL.
            dimension_semantics=("parallel",),
            vmem_limit_bytes=32 * 1024 * 1024,
        ),
        cost_estimate=cost,
    )(x_in, *flat_params)

    return y if n_pad == n else y[:n]


def cnet_reference_f32(x, params):
    """Pure-JAX f32 reference with PyTorch forward semantics."""
    h = x
    for i, (w, b) in enumerate(params):
        h = h @ w + b
        if i < 5:
            h = jnp.maximum(h, 0.0)
    return h


def cnet_reference_bf16(x, params):
    """Pure-JAX reference mirroring the kernel's bf16-compute / f32-accumulate."""
    h = x.astype(jnp.bfloat16)
    for i, (w, b) in enumerate(params):
        z = jnp.dot(h, w.astype(jnp.bfloat16),
                    preferred_element_type=jnp.float32) + b
        if i < 5:
            h = jnp.maximum(z, 0.0).astype(jnp.bfloat16)
        else:
            h = z
    return h


if __name__ == "__main__":
    key = jax.random.PRNGKey(0)
    key, kx, kx2 = jax.random.split(key, 3)
    params = init_params(key)

    # Small batch: exercises the single-tile, zero-padding fast path.
    batch = 200
    x = jax.random.normal(kx, (batch, SIZES[0]), jnp.float32)
    y = jax.block_until_ready(cnet_forward(x, params))
    assert y.shape == (batch, SIZES[-1])
    assert jnp.allclose(y, cnet_reference_bf16(x, params), atol=1e-2, rtol=1e-2), \
        "mismatch vs bf16-matched reference (small batch)"
    assert jnp.allclose(y, cnet_reference_f32(x, params), atol=1e-1, rtol=1e-1), \
        "mismatch vs f32 reference (small batch)"

    # Larger batch: exercises the multi-tile grid + batch padding path.
    batch2 = 2500
    x2 = jax.random.normal(kx2, (batch2, SIZES[0]), jnp.float32)
    y2 = jax.block_until_ready(cnet_forward(x2, params))
    assert y2.shape == (batch2, SIZES[-1])
    assert jnp.allclose(y2, cnet_reference_bf16(x2, params), atol=1e-2, rtol=1e-2), \
        "mismatch vs bf16-matched reference (large batch)"

    print("KERNEL_OK")
</pallas_src>

<mosaic_0001>
module attributes {stable_mosaic.version = 11 : i64} {
  func.func @_probe_kernel(%arg0: i32, %arg1: memref<8x128xf32, #tpu.memory_space<vmem>>, %arg2: memref<8x128xf32, #tpu.memory_space<vmem>>) attributes {dimension_semantics = [#tpu.dimension_semantics<arbitrary>], iteration_bounds = array<i64: 1>, scalar_prefetch = 0 : i64, scratch_operands = 0 : i64, tpu.core_type = #tpu.core_type<tc>, window_params = [{pipeline_mode = #tpu.pipeline_mode<synchronous>, transform_indices = @transform_0, window_bounds = array<i64: 8, 128>}, {pipeline_mode = #tpu.pipeline_mode<synchronous>, transform_indices = @transform_1, window_bounds = array<i64: 8, 128>}]} {
    %c0 = arith.constant 0 : index
    %c0_0 = arith.constant 0 : index
    %0 = vector.load %arg1[%c0, %c0_0] : memref<8x128xf32, #tpu.memory_space<vmem>>, vector<8x128xf32>
    %cst = arith.constant 1.000000e+00 : f32
    %1 = vector.broadcast %cst : f32 to vector<8x128xf32>
    %2 = arith.addf %0, %1 : vector<8x128xf32>
    %c0_1 = arith.constant 0 : index
    %c0_2 = arith.constant 0 : index
    %3 = vector.load %arg2[%c0_1, %c0_2] : memref<8x128xf32, #tpu.memory_space<vmem>>, vector<8x128xf32>
    tpu.vector_store %arg2[%c0_1, %c0_2], %2 {strides = array<i32>} : memref<8x128xf32, #tpu.memory_space<vmem>>, vector<8x128xf32>,
    return
  }
  func.func @transform_0(%arg0: i32) -> (i32, i32) {
    %c0_i32 = arith.constant 0 : i32
    %c0_i32_0 = arith.constant 0 : i32
    %c0_i32_1 = arith.constant 0 : i32
    return %c0_i32, %c0_i32_0 : i32, i32
  }
  func.func @transform_1(%arg0: i32) -> (i32, i32) {
    %c0_i32 = arith.constant 0 : i32
    %c0_i32_0 = arith.constant 0 : i32
    %c0_i32_1 = arith.constant 0 : i32
    return %c0_i32, %c0_i32_0 : i32, i32
  }
}

module attributes {stable_mosaic.version = 11 : i64} {
  func.func @cnet_kernel(%arg0: i32, %arg1: memref<200x13xf32, #tpu.memory_space<vmem>>, %arg2: memref<13x96xbf16, #tpu.memory_space<vmem>>, %arg3: memref<1x96xf32, #tpu.memory_space<vmem>>, %arg4: memref<96x96xbf16, #tpu.memory_space<vmem>>, %arg5: memref<1x96xf32, #tpu.memory_space<vmem>>, %arg6: memref<96x64xbf16, #tpu.memory_space<vmem>>, %arg7: memref<1x64xf32, #tpu.memory_space<vmem>>, %arg8: memref<64x64xbf16, #tpu.memory_space<vmem>>, %arg9: memref<1x64xf32, #tpu.memory_space<vmem>>, %arg10: memref<64x32xbf16, #tpu.memory_space<vmem>>, %arg11: memref<1x32xf32, #tpu.memory_space<vmem>>, %arg12: memref<32x2xbf16, #tpu.memory_space<vmem>>, %arg13: memref<1x2xf32, #tpu.memory_space<vmem>>, %arg14: memref<200x2xf32, #tpu.memory_space<vmem>>) attributes {dimension_semantics = [#tpu.dimension_semantics<parallel>], iteration_bounds = array<i64: 1>, scalar_prefetch = 0 : i64, scratch_operands = 0 : i64, tpu.core_type = #tpu.core_type<tc>, window_params = [{transform_indices = @transform_0, window_bounds = array<i64: 200, 13>}, {pipeline_mode = #tpu.pipeline_mode<synchronous>, transform_indices = @transform_1, window_bounds = array<i64: 13, 96>}, {pipeline_mode = #tpu.pipeline_mode<synchronous>, transform_indices = @transform_2, window_bounds = array<i64: 1, 96>}, {pipeline_mode = #tpu.pipeline_mode<synchronous>, transform_indices = @transform_3, window_bounds = array<i64: 96, 96>}, {pipeline_mode = #tpu.pipeline_mode<synchronous>, transform_indices = @transform_4, window_bounds = array<i64: 1, 96>}, {pipeline_mode = #tpu.pipeline_mode<synchronous>, transform_indices = @transform_5, window_bounds = array<i64: 96, 64>}, {pipeline_mode = #tpu.pipeline_mode<synchronous>, transform_indices = @transform_6, window_bounds = array<i64: 1, 64>}, {pipeline_mode = #tpu.pipeline_mode<synchronous>, transform_indices = @transform_7, window_bounds = array<i64: 64, 64>}, {pipeline_mode = #tpu.pipeline_mode<synchronous>, transform_indices = @transform_8, window_bounds = array<i64: 1, 64>}, {pipeline_mode = #tpu.pipeline_mode<synchronous>, transform_indices = @transform_9, window_bounds = array<i64: 64, 32>}, {pipeline_mode = #tpu.pipeline_mode<synchronous>, transform_indices = @transform_10, window_bounds = array<i64: 1, 32>}, {pipeline_mode = #tpu.pipeline_mode<synchronous>, transform_indices = @transform_11, window_bounds = array<i64: 32, 2>}, {pipeline_mode = #tpu.pipeline_mode<synchronous>, transform_indices = @transform_12, window_bounds = array<i64: 1, 2>}, {transform_indices = @transform_13, window_bounds = array<i64: 200, 2>}]} {
    %c0 = arith.constant 0 : index
    %c0_0 = arith.constant 0 : index
    %0 = vector.load %arg1[%c0, %c0_0] : memref<200x13xf32, #tpu.memory_space<vmem>>, vector<200x13xf32>
    %1 = arith.truncf %0 : vector<200x13xf32> to vector<200x13xbf16>
    %c0_1 = arith.constant 0 : index
    %c0_2 = arith.constant 0 : index
    %2 = vector.load %arg2[%c0_1, %c0_2] : memref<13x96xbf16, #tpu.memory_space<vmem>>, vector<13x96xbf16>
    %cst = arith.constant dense<0.000000e+00> : vector<200x96xf32>
    %3 = tpu.matmul %1, %2, %cst {dimension_numbers = #tpu.dot_dimension_numbers<[1], [0], [0], [1], [0, 0, 1, 1], [], []>} : vector<200x13xbf16>, vector<13x96xbf16>, vector<200x96xf32> -> vector<200x96xf32>
    %c0_3 = arith.constant 0 : index
    %c0_4 = arith.constant 0 : index
    %4 = vector.load %arg3[%c0_3, %c0_4] : memref<1x96xf32, #tpu.memory_space<vmem>>, vector<1x96xf32>
    %5 = vector.broadcast %4 : vector<1x96xf32> to vector<200x96xf32>
    %6 = arith.addf %3, %5 : vector<200x96xf32>
    %cst_5 = arith.constant 0.000000e+00 : f32
    %7 = vector.broadcast %cst_5 : f32 to vector<200x96xf32>
    %8 = arith.maximumf %6, %7 : vector<200x96xf32>
    %9 = arith.truncf %8 : vector<200x96xf32> to vector<200x96xbf16>
    %c0_6 = arith.constant 0 : index
    %c0_7 = arith.constant 0 : index
    %10 = vector.load %arg4[%c0_6, %c0_7] : memref<96x96xbf16, #tpu.memory_space<vmem>>, vector<96x96xbf16>
    %cst_8 = arith.constant dense<0.000000e+00> : vector<200x96xf32>
    %11 = tpu.matmul %9, %10, %cst_8 {dimension_numbers = #tpu.dot_dimension_numbers<[1], [0], [0], [1], [0, 0, 1, 1], [], []>} : vector<200x96xbf16>, vector<96x96xbf16>, vector<200x96xf32> -> vector<200x96xf32>
    %c0_9 = arith.constant 0 : index
    %c0_10 = arith.constant 0 : index
    %12 = vector.load %arg5[%c0_9, %c0_10] : memref<1x96xf32, #tpu.memory_space<vmem>>, vector<1x96xf32>
    %13 = vector.broadcast %12 : vector<1x96xf32> to vector<200x96xf32>
    %14 = arith.addf %11, %13 : vector<200x96xf32>
    %cst_11 = arith.constant 0.000000e+00 : f32
    %15 = vector.broadcast %cst_11 : f32 to vector<200x96xf32>
    %16 = arith.maximumf %14, %15 : vector<200x96xf32>
    %17 = arith.truncf %16 : vector<200x96xf32> to vector<200x96xbf16>
    %c0_12 = arith.constant 0 : index
    %c0_13 = arith.constant 0 : index
    %18 = vector.load %arg6[%c0_12, %c0_13] : memref<96x64xbf16, #tpu.memory_space<vmem>>, vector<96x64xbf16>
    %cst_14 = arith.constant dense<0.000000e+00> : vector<200x64xf32>
    %19 = tpu.matmul %17, %18, %cst_14 {dimension_numbers = #tpu.dot_dimension_numbers<[1], [0], [0], [1], [0, 0, 1, 1], [], []>} : vector<200x96xbf16>, vector<96x64xbf16>, vector<200x64xf32> -> vector<200x64xf32>
    %c0_15 = arith.constant 0 : index
    %c0_16 = arith.constant 0 : index
    %20 = vector.load %arg7[%c0_15, %c0_16] : memref<1x64xf32, #tpu.memory_space<vmem>>, vector<1x64xf32>
    %21 = vector.broadcast %20 : vector<1x64xf32> to vector<200x64xf32>
    %22 = arith.addf %19, %21 : vector<200x64xf32>
    %cst_17 = arith.constant 0.000000e+00 : f32
    %23 = vector.broadcast %cst_17 : f32 to vector<200x64xf32>
    %24 = arith.maximumf %22, %23 : vector<200x64xf32>
    %25 = arith.truncf %24 : vector<200x64xf32> to vector<200x64xbf16>
    %c0_18 = arith.constant 0 : index
    %c0_19 = arith.constant 0 : index
    %26 = vector.load %arg8[%c0_18, %c0_19] : memref<64x64xbf16, #tpu.memory_space<vmem>>, vector<64x64xbf16>
    %cst_20 = arith.constant dense<0.000000e+00> : vector<200x64xf32>
    %27 = tpu.matmul %25, %26, %cst_20 {dimension_numbers = #tpu.dot_dimension_numbers<[1], [0], [0], [1], [0, 0, 1, 1], [], []>} : vector<200x64xbf16>, vector<64x64xbf16>, vector<200x64xf32> -> vector<200x64xf32>
    %c0_21 = arith.constant 0 : index
    %c0_22 = arith.constant 0 : index
    %28 = vector.load %arg9[%c0_21, %c0_22] : memref<1x64xf32, #tpu.memory_space<vmem>>, vector<1x64xf32>
    %29 = vector.broadcast %28 : vector<1x64xf32> to vector<200x64xf32>
    %30 = arith.addf %27, %29 : vector<200x64xf32>
    %cst_23 = arith.constant 0.000000e+00 : f32
    %31 = vector.broadcast %cst_23 : f32 to vector<200x64xf32>
    %32 = arith.maximumf %30, %31 : vector<200x64xf32>
    %33 = arith.truncf %32 : vector<200x64xf32> to vector<200x64xbf16>
    %c0_24 = arith.constant 0 : index
    %c0_25 = arith.constant 0 : index
    %34 = vector.load %arg10[%c0_24, %c0_25] : memref<64x32xbf16, #tpu.memory_space<vmem>>, vector<64x32xbf16>
    %cst_26 = arith.constant dense<0.000000e+00> : vector<200x32xf32>
    %35 = tpu.matmul %33, %34, %cst_26 {dimension_numbers = #tpu.dot_dimension_numbers<[1], [0], [0], [1], [0, 0, 1, 1], [], []>} : vector<200x64xbf16>, vector<64x32xbf16>, vector<200x32xf32> -> vector<200x32xf32>
    %c0_27 = arith.constant 0 : index
    %c0_28 = arith.constant 0 : index
    %36 = vector.load %arg11[%c0_27, %c0_28] : memref<1x32xf32, #tpu.memory_space<vmem>>, vector<1x32xf32>
    %37 = vector.broadcast %36 : vector<1x32xf32> to vector<200x32xf32>
    %38 = arith.addf %35, %37 : vector<200x32xf32>
    %cst_29 = arith.constant 0.000000e+00 : f32
    %39 = vector.broadcast %cst_29 : f32 to vector<200x32xf32>
    %40 = arith.maximumf %38, %39 : vector<200x32xf32>
    %41 = arith.truncf %40 : vector<200x32xf32> to vector<200x32xbf16>
    %c0_30 = arith.constant 0 : index
    %c0_31 = arith.constant 0 : index
    %42 = vector.load %arg12[%c0_30, %c0_31] : memref<32x2xbf16, #tpu.memory_space<vmem>>, vector<32x2xbf16>
    %cst_32 = arith.constant dense<0.000000e+00> : vector<200x2xf32>
    %43 = tpu.matmul %41, %42, %cst_32 {dimension_numbers = #tpu.dot_dimension_numbers<[1], [0], [0], [1], [0, 0, 1, 1], [], []>} : vector<200x32xbf16>, vector<32x2xbf16>, vector<200x2xf32> -> vector<200x2xf32>
    %c0_33 = arith.constant 0 : index
    %c0_34 = arith.constant 0 : index
    %44 = vector.load %arg13[%c0_33, %c0_34] : memref<1x2xf32, #tpu.memory_space<vmem>>, vector<1x2xf32>
    %45 = vector.broadcast %44 : vector<1x2xf32> to vector<200x2xf32>
    %46 = arith.addf %43, %45 : vector<200x2xf32>
    %c0_35 = arith.constant 0 : index
    %c0_36 = arith.constant 0 : index
    %47 = vector.load %arg14[%c0_35, %c0_36] : memref<200x2xf32, #tpu.memory_space<vmem>>, vector<200x2xf32>
    tpu.vector_store %arg14[%c0_35, %c0_36], %46 {strides = array<i32>} : memref<200x2xf32, #tpu.memory_space<vmem>>, vector<200x2xf32>,
    return
  }
  func.func @transform_0(%arg0: i32) -> (i32, i32) {
    %c0_i32 = arith.constant 0 : i32
    %c0_i32_0 = arith.constant 0 : i32
    return %arg0, %c0_i32 : i32, i32
  }
  func.func @transform_1(%arg0: i32) -> (i32, i32) {
    %c0_i32 = arith.constant 0 : i32
    %c0_i32_0 = arith.constant 0 : i32
    %c0_i32_1 = arith.constant 0 : i32
    return %c0_i32, %c0_i32_0 : i32, i32
  }
  func.func @transform_2(%arg0: i32) -> (i32, i32) {
    %c0_i32 = arith.constant 0 : i32
    %c0_i32_0 = arith.constant 0 : i32
    %c0_i32_1 = arith.constant 0 : i32
    return %c0_i32, %c0_i32_0 : i32, i32
  }
  func.func @transform_3(%arg0: i32) -> (i32, i32) {
    %c0_i32 = arith.constant 0 : i32
    %c0_i32_0 = arith.constant 0 : i32
    %c0_i32_1 = arith.constant 0 : i32
    return %c0_i32, %c0_i32_0 : i32, i32
  }
  func.func @transform_4(%arg0: i32) -> (i32, i32) {
    %c0_i32 = arith.constant 0 : i32
    %c0_i32_0 = arith.constant 0 : i32
    %c0_i32_1 = arith.constant 0 : i32
    return %c0_i32, %c0_i32_0 : i32, i32
  }
  func.func @transform_5(%arg0: i32) -> (i32, i32) {
    %c0_i32 = arith.constant 0 : i32
    %c0_i32_0 = arith.constant 0 : i32
    %c0_i32_1 = arith.constant 0 : i32
    return %c0_i32, %c0_i32_0 : i32, i32
  }
  func.func @transform_6(%arg0: i32) -> (i32, i32) {
    %c0_i32 = arith.constant 0 : i32
    %c0_i32_0 = arith.constant 0 : i32
    %c0_i32_1 = arith.constant 0 : i32
    return %c0_i32, %c0_i32_0 : i32, i32
  }
  func.func @transform_7(%arg0: i32) -> (i32, i32) {
    %c0_i32 = arith.constant 0 : i32
    %c0_i32_0 = arith.constant 0 : i32
    %c0_i32_1 = arith.constant 0 : i32
    return %c0_i32, %c0_i32_0 : i32, i32
  }
  func.func @transform_8(%arg0: i32) -> (i32, i32) {
    %c0_i32 = arith.constant 0 : i32
    %c0_i32_0 = arith.constant 0 : i32
    %c0_i32_1 = arith.constant 0 : i32
    return %c0_i32, %c0_i32_0 : i32, i32
  }
  func.func @transform_9(%arg0: i32) -> (i32, i32) {
    %c0_i32 = arith.constant 0 : i32
    %c0_i32_0 = arith.constant 0 : i32
    %c0_i32_1 = arith.constant 0 : i32
    return %c0_i32, %c0_i32_0 : i32, i32
  }
  func.func @transform_10(%arg0: i32) -> (i32, i32) {
    %c0_i32 = arith.constant 0 : i32
    %c0_i32_0 = arith.constant 0 : i32
    %c0_i32_1 = arith.constant 0 : i32
    return %c0_i32, %c0_i32_0 : i32, i32
  }
  func.func @transform_11(%arg0: i32) -> (i32, i32) {
    %c0_i32 = arith.constant 0 : i32
    %c0_i32_0 = arith.constant 0 : i32
    %c0_i32_1 = arith.constant 0 : i32
    return %c0_i32, %c0_i32_0 : i32, i32
  }
  func.func @transform_12(%arg0: i32) -> (i32, i32) {
    %c0_i32 = arith.constant 0 : i32
    %c0_i32_0 = arith.constant 0 : i32
    %c0_i32_1 = arith.constant 0 : i32
    return %c0_i32, %c0_i32_0 : i32, i32
  }
  func.func @transform_13(%arg0: i32) -> (i32, i32) {
    %c0_i32 = arith.constant 0 : i32
    %c0_i32_0 = arith.constant 0 : i32
    return %arg0, %c0_i32 : i32, i32
  }
}

</mosaic_0001>

<bundles_post_ra>
// kernel: tpu_custom_call.1
= control target key start
LH: loop header
LB: loop body
LE: loop exit
PB: predicated region body
PF: predicated region fallthrough
CT: control target
= control target key end

     0   :  { %6 = vsyncpa [#allocation3], 0  ;;  %s103_s0 = inlined_call_operand.hbm [shape: f32[8,128], index: 0, kind: input, shape index: {}]   ;;  %s104_s1 = inlined_call_operand.hbm [shape: f32[8,128], index: 1, kind: output, shape index: {}]  }
   0x1   :  { %7 = vsyncpa [#allocation4], 0  ;;  %s85_s6 = smov [#allocation2]  }
   0x2   :  { %s14_s7 = sshll.u32 %s85_s6, 4  ;;  %s15_s7 = int_to_ptr.vmem [resolvable:$true] %s14_s7 }
   0x3   :  { %s49_s8 = scalar_lea.vmem %s15_s7, 128  ;;  %p54_p1 = scmp.lt.s32.totalorder %s15_s7, %s15_s7 }
   0x4   :  { %p50_p0 = scmp.ne.s32.totalorder %s15_s7, %s49_s8  ;;  %p55_p2 = scmp.lt.s32.totalorder %s49_s8, %s49_s8 }
   0x6   :  { %p56_p3 = por %p55_p2, %p54_p1 }
   0x8   :  { %p57_p4 = pnand %p56_p3, %p50_p0 }
   0xa   :  { %60 = shalt.err (!%p57_p4)
}
   0xb   :  { %17 = dma.hbm_to_vmem [thread:$0]  %s103_s0, 128, %s15_s7, [#allocation3]  }
   0xc   :  { %81 = dma.done.wait [#allocation3], 128  }
   0xd   :  { %82 = vsyncadd [#allocation3], 4294967168  ;;  %s86_s11 = smov [#allocation5]   ;;  %v21_v0 = vld [vmem:[#allocation2] sm:$0xff] }
   0xe   :  { %s30_s12 = sshll.u32 %s86_s11, 4  ;;  %v22_v1 = vadd.f32 1.0, %v21_v0  ;;  %s31_s12 = int_to_ptr.vmem [resolvable:$true] %s30_s12 }
   0xf   :  { %s61_s13 = scalar_lea.vmem %s31_s12, 128  ;;  %p66_p6 = scmp.lt.s32.totalorder %s31_s12, %s31_s12 }
  0x10   :  { %23 = vst [vmem:[#allocation5] sm:$0xff] %v22_v1  ;;  %p62_p5 = scmp.ne.s32.totalorder %s31_s12, %s61_s13  ;;  %p67_p7 = scmp.lt.s32.totalorder %s61_s13, %s61_s13 }
  0x12   :  { %p68_p8 = por %p67_p7, %p66_p6 }
  0x14   :  { %p69_p9 = pnand %p68_p8, %p62_p5 }
  0x16   :  { %72 = shalt.err (!%p69_p9)
}
  0x17   :  { %33 = dma.vmem_to_hbm [thread:$0]  %s31_s12, 128, %s104_s1, [#allocation4]  }
  0x18   :  { %83 = dma.done.wait [#allocation4], 128  }
  0x19   :  { %84 = vsyncadd [#allocation4], 4294967168 }
  0x1a   :  { %37 = vsyncpa [#allocation3], 1 }
  0x1b   :  { %38 = vsyncpa [#allocation4], 1 }

// kernel: tpu_custom_call.1
= control target key start
LH: loop header
LB: loop body
LE: loop exit
PB: predicated region body
PF: predicated region fallthrough
CT: control target
= control target key end

     0   :  { %vm137_vm0 = vcmask 1045504   ;;  %vm138_vm1 = vcmask 1046528   ;;  %v2185_v0 = vmov 0.0   ;;  %v2186_v2 = vmov 65535   ;;  %s2941_s1 = inlined_call_operand.vmem [shape: bf16[13,96], index: 1, kind: input, shape index: {}]   ;;  %s2942_s0 = inlined_call_operand.vmem [shape: f32[200,13], index: 0, kind: input, shape index: {}]   ;;  %s2943_s3 = inlined_call_operand.vmem [shape: bf16[96,96], index: 3, kind: input, shape index: {}]   ;;  %s2944_s5 = inlined_call_operand.vmem [shape: bf16[96,64], index: 5, kind: input, shape index: {}]   ;;  %s2945_s2 = inlined_call_operand.vmem [shape: f32[1,96], index: 2, kind: input, shape index: {}]   ;;  %s2946_s7 = inlined_call_operand.vmem [shape: bf16[64,64], index: 7, kind: input, shape index: {}]   ;;  %s2947_s4 = inlined_call_operand.vmem [shape: f32[1,96], index: 4, kind: input, shape index: {}]   ;;  %s2948_s9 = inlined_call_operand.vmem [shape: bf16[64,32], index: 9, kind: input, shape index: {}]   ;;  %s2949_s6 = inlined_call_operand.vmem [shape: f32[1,64], index: 6, kind: input, shape index: {}]   ;;  %s2950_s11 = inlined_call_operand.vmem [shape: bf16[32,2], index: 11, kind: input, shape index: {}]   ;;  %s2951_s8 = inlined_call_operand.vmem [shape: f32[1,64], index: 8, kind: input, shape index: {}]   ;;  %s2952_s10 = inlined_call_operand.vmem [shape: f32[1,32], index: 10, kind: input, shape index: {}]   ;;  %s2953_s12 = inlined_call_operand.vmem [shape: f32[1,2], index: 12, kind: input, shape index: {}]   ;;  %s2954_s13 = inlined_call_operand.vmem [shape: f32[200,2], index: 13, kind: output, shape index: {}]  }
   0x1   :  { %1797 = vmatprep.subr.bf16.mxu0 %v2185_v0  ;;  %v2162_v1 = vld [vmem:[%s2941_s1] sm:$0x7f]   ;;  %1851 = vmatprep.subr.bf16.mxu1 %v2185_v0  ;;  %v139_v3 = vsel %vm137_vm0, 4294967295, %v2186_v2  ;;  %v46_v5 = vld [vmem:[%s2942_s0 + $0x8] sm:$0xff]  ;;  %vm2187_vm2 = vmmov 0   ;;  %vm97_vm3 = vcmask 105472  }
   0x2   :  { %v45_v4 = vld [vmem:[%s2942_s0] sm:$0xff]  ;;  %v140_v6 = vsel %vm138_vm1, %v139_v3, 0  ;;  %1799 = vmatprep.mubr.msk.bf16.mxu0 %vm2187_vm2, %v2185_v0  ;;  %1863 = vmatprep.mubr.msk.bf16.mxu1 %vm2187_vm2, %v2185_v0  ;;  %v47_v9 = vld [vmem:[%s2942_s0 + $0x10] sm:$0xff]  ;;  %v48_v10 = vld [vmem:[%s2942_s0 + $0x18] sm:$0xff]  ;;  %vm373_vm4 = vcmask 785408   ;;  %vm894_vm5 = vcmask 523264  }
   0x3   :  { %v142_v7 = vand.u32 %v2162_v1, %v140_v6  ;;  %v70_v8 = vpack.c.bf16 %v46_v5, %v45_v4  ;;  %v2163_v11 = vld [vmem:[%s2943_s3 + $0x28] sm:$0xff]   ;;  %v71_v12 = vpack.c.bf16 %v48_v10, %v47_v9  ;;  %v2164_v13 = vld [vmem:[%s2943_s3 + $0x20] sm:$0xff]   ;;  %v2165_v14 = vld [vmem:[%s2943_s3 + $0x18] sm:$0xff]   ;;  %vm1383_vm6 = vcmask 261120  }
   0x4   :  { %1852 = vmatpush3.bf16.msra.mxu1 %v2163_v11  ;;  %v49_v15 = vld [vmem:[%s2942_s0 + $0x20] sm:$0xff]  ;;  %v50_v16 = vld [vmem:[%s2942_s0 + $0x28] sm:$0xff]  ;;  %v51_v18 = vld [vmem:[%s2942_s0 + $0x30] sm:$0xff]  ;;  %vm1559_vm7 = vcmask 15360  }
   0x5   :  { %1798 = vmatpush3.bf16.msra.mxu0 %v142_v7  ;;  %1853 = vmatprep.subr.bf16.mxu1 %v2185_v0  ;;  %v72_v17 = vpack.c.bf16 %v50_v16, %v49_v15  ;;  %v52_v19 = vld [vmem:[%s2942_s0 + $0x38] sm:$0xff]  ;;  %v53_v21 = vld [vmem:[%s2942_s0 + $0x40] sm:$0xff]  ;;  %v54_v22 = vld [vmem:[%s2942_s0 + $0x48] sm:$0xff] }
   0x6   :  { %1915 = vmatprep.subr.bf16.mxu0 %v2185_v0  ;;  %v73_v20 = vpack.c.bf16 %v52_v19, %v51_v18  ;;  %v74_v23 = vpack.c.bf16 %v54_v22, %v53_v21  ;;  %v55_v24 = vld [vmem:[%s2942_s0 + $0x50] sm:$0xff]  ;;  %v56_v25 = vld [vmem:[%s2942_s0 + $0x58] sm:$0xff]  ;;  %v57_v27 = vld [vmem:[%s2942_s0 + $0x60] sm:$0xff] }
   0x7   :  { %v75_v26 = vpack.c.bf16 %v56_v25, %v55_v24  ;;  %v58_v28 = vld [vmem:[%s2942_s0 + $0x68] sm:$0xff]  ;;  %v59_v30 = vld [vmem:[%s2942_s0 + $0x70] sm:$0xff]  ;;  %v60_v31 = vld [vmem:[%s2942_s0 + $0x78] sm:$0xff] }
   0x8   :  { %1800 = vmatmul.mubr.msk.bf16.vlgmr.msra.gmra.mxu0 %vm97_vm3, %v70_v8  ;;  %1854 = vmatpush3.bf16.msra.mxu1 %v2164_v13  ;;  %v76_v29 = vpack.c.bf16 %v58_v28, %v57_v27  ;;  %v77_v32 = vpack.c.bf16 %v60_v31, %v59_v30  ;;  %v61_v33 = vld [vmem:[%s2942_s0 + $0x80] sm:$0xff]  ;;  %v62_v34 = vld [vmem:[%s2942_s0 + $0x88] sm:$0xff]  ;;  %v2166_v36 = vld [vmem:[%s2943_s3 + $0x10] sm:$0xff]  }
   0x9   :  { %1803 = vmatprep.mubr.msk.bf16.mxu0 %vm2187_vm2, %v2185_v0  ;;  %1855 = vmatprep.subr.bf16.mxu1 %v2185_v0  ;;  %v78_v35 = vpack.c.bf16 %v62_v34, %v61_v33  ;;  %v63_v37 = vld [vmem:[%s2942_s0 + $0x90] sm:$0xff]  ;;  %v64_v38 = vld [vmem:[%s2942_s0 + $0x98] sm:$0xff]  ;;  %v2167_v39 = vld [vmem:[%s2943_s3 + $0x8] sm:$0xff]  }
   0xa   :  { %v79_v40 = vpack.c.bf16 %v64_v38, %v63_v37  ;;  %v2168_v41 = vld [vmem:[%s2943_s3] sm:$0xff]   ;;  %v66_v43 = vld [vmem:[%s2942_s0 + $0xa8] sm:$0xff]  ;;  %v67_v45 = vld [vmem:[%s2942_s0 + $0xb0] sm:$0xff] }
   0xb   :  { %v65_v42 = vld [vmem:[%s2942_s0 + $0xa0] sm:$0xff]  ;;  %v68_v46 = vld [vmem:[%s2942_s0 + $0xb8] sm:$0xff]  ;;  %v2169_v50 = vld [vmem:[%s2944_s5 + $0x28] sm:$0xff]  }
   0xc   :  { %1856 = vmatpush3.bf16.msra.mxu1 %v2165_v14  ;;  %v80_v44 = vpack.c.bf16 %v66_v43, %v65_v42  ;;  %v81_v47 = vpack.c.bf16 %v68_v46, %v67_v45  ;;  %v69_v48 = vld [vmem:[%s2942_s0 + $0xc0] sm:$0xff]  ;;  %1916 = vmatpush3.bf16.msra.mxu0 %v2169_v50  ;;  %v2171_v52 = vld [vmem:[%s2944_s5 + $0x18] sm:$0xff]   ;;  %v2172_v53 = vld [vmem:[%s2944_s5 + $0x10] sm:$0xff]  }
   0xd   :  { %1857 = vmatprep.subr.bf16.mxu1 %v2185_v0  ;;  %v82_v49 = vpack.c.bf16 %v69_v48, %v69_v48  ;;  %1917 = vmatprep.subr.bf16.mxu0 %v2185_v0  ;;  %v2170_v51 = vld [vmem:[%s2944_s5 + $0x20] sm:$0xff]   ;;  %v2173_v54 = vld [vmem:[%s2944_s5 + $0x8] sm:$0xff]  }
   0xe   :  { %v2174_v55 = vld [vmem:[%s2944_s5] sm:$0xff]  }
   0xf   :  { %v2433_v56 = vld [vmem:[%s2945_s2] ss:$0 sm:$0xff] }
  0x10   :  { %1804 = vmatmul.mubr.msk.bf16.gmra.mxu0 %vm97_vm3, %v71_v12  ;;  %1858 = vmatpush3.bf16.msra.mxu1 %v2166_v36 }
  0x11   :  { %1807 = vmatprep.mubr.msk.bf16.mxu0 %vm2187_vm2, %v2185_v0  ;;  %1859 = vmatprep.subr.bf16.mxu1 %v2185_v0 }
  0x12   :  { %1918 = vmatpush3.bf16.msra.mxu0 %v2170_v51 }
  0x13   :  { %1919 = vmatprep.subr.bf16.mxu0 %v2185_v0 }
  0x14   :  { %1860 = vmatpush3.bf16.msra.mxu1 %v2167_v39 }
  0x15   :  { %1861 = vmatprep.subr.bf16.mxu1 %v2185_v0 }
  0x16   :  { %1920 = vmatpush3.bf16.msra.mxu0 %v2171_v52 }
  0x17   :  { %1921 = vmatprep.subr.bf16.mxu0 %v2185_v0 }
  0x18   :  { %1808 = vmatmul.mubr.msk.bf16.gmra.mxu0 %vm97_vm3, %v72_v17  ;;  %1862 = vmatpush3.bf16.msra.mxu1 %v2168_v41 }
  0x19   :  { %1811 = vmatprep.mubr.msk.bf16.mxu0 %vm2187_vm2, %v2185_v0  ;;  %1979 = vmatprep.subr.bf16.mxu1 %v2185_v0 }
  0x1a   :  { %1922 = vmatpush3.bf16.msra.mxu0 %v2172_v53 }
  0x1b   :  { %1923 = vmatprep.subr.bf16.mxu0 %v2185_v0 }
  0x1e   :  { %1924 = vmatpush3.bf16.msra.mxu0 %v2173_v54 }
  0x1f   :  { %1925 = vmatprep.subr.bf16.mxu0 %v2185_v0 }
  0x20   :  { %1812 = vmatmul.mubr.msk.bf16.gmra.mxu0 %vm97_vm3, %v73_v20 }
  0x21   :  { %1815 = vmatprep.mubr.msk.bf16.mxu0 %vm2187_vm2, %v2185_v0 }
  0x22   :  { %1926 = vmatpush3.bf16.msra.mxu0 %v2174_v55 }
  0x23   :  { %2039 = vmatprep.subr.bf16.mxu0 %v2185_v0 }
  0x28   :  { %1816 = vmatmul.mubr.msk.bf16.gmra.mxu0 %vm97_vm3, %v74_v23 }
  0x29   :  { %1819 = vmatprep.mubr.msk.bf16.mxu0 %vm2187_vm2, %v2185_v0 }
  0x30   :  { %1820 = vmatmul.mubr.msk.bf16.gmra.mxu0 %vm97_vm3, %v75_v26 }
  0x31   :  { %1823 = vmatprep.mubr.msk.bf16.mxu0 %vm2187_vm2, %v2185_v0 }
  0x38   :  { %1824 = vmatmul.mubr.msk.bf16.gmra.mxu0 %vm97_vm3, %v76_v29 }
  0x39   :  { %1827 = vmatprep.mubr.msk.bf16.mxu0 %vm2187_vm2, %v2185_v0 }
  0x40   :  { %1828 = vmatmul.mubr.msk.bf16.gmra.mxu0 %vm97_vm3, %v77_v32 }
  0x41   :  { %1831 = vmatprep.mubr.msk.bf16.mxu0 %vm2187_vm2, %v2185_v0 }
  0x48   :  { %1832 = vmatmul.mubr.msk.bf16.gmra.mxu0 %vm97_vm3, %v78_v35 }
  0x49   :  { %1835 = vmatprep.mubr.msk.bf16.mxu0 %vm2187_vm2, %v2185_v0 }
  0x50   :  { %1836 = vmatmul.mubr.msk.bf16.gmra.mxu0 %vm97_vm3, %v79_v40 }
  0x51   :  { %1839 = vmatprep.mubr.msk.bf16.mxu0 %vm2187_vm2, %v2185_v0 }
  0x58   :  { %1840 = vmatmul.mubr.msk.bf16.gmra.mxu0 %vm97_vm3, %v80_v44 }
  0x59   :  { %1843 = vmatprep.mubr.msk.bf16.mxu0 %vm2187_vm2, %v2185_v0 }
  0x60   :  { %1844 = vmatmul.mubr.msk.bf16.gmra.mxu0 %vm97_vm3, %v81_v47 }
  0x61   :  { %1847 = vmatprep.mubr.msk.bf16.mxu0 %vm2187_vm2, %v2185_v0 }
  0x68   :  { %1848 = vmatmul.mubr.msk.bf16.gmra.mxu0 %vm97_vm3, %v82_v49 }
  0x69   :  { %1927 = vmatprep.mubr.msk.bf16.mxu0 %vm2187_vm2, %v2185_v0 }
  0xc8   :  { %v178_v57 = vpop.f32.mrf.mxu0 }
  0xc9   :  { %v179_v59 = vadd.f32 %v2433_v56, %v178_v57 }
  0xca   :  { %v1801_v58 = vpop.f32.mrf.mxu0 }
  0xcb   :  { %v280_v63 = vmax.f32 %v179_v59, 0.0 }
  0xcc   :  { %v181_v60 = vpop.f32.mrf.mxu0 }
  0xcd   :  { %v182_v61 = vadd.f32 %v2433_v56, %v181_v60 }
  0xce   :  { %v1802_v62 = vpop.f32.mrf.mxu0 }
  0xcf   :  { %v281_v1 = vmax.f32 %v182_v61, 0.0 }
  0xd0   :  { %v186_v2 = vpop.f32.mrf.mxu0 }
  0xd1   :  { %v305_v3 = vpack.c.bf16 %v281_v1, %v280_v63  ;;  %v187_v5 = vadd.f32 %v2433_v56, %v186_v2 }
  0xd2   :  { %v1805_v4 = vpop.f32.mrf.mxu0 }
  0xd3   :  { %1864 = vmatmul.mubr.msk.bf16.vlgmr.msra.gmra.mxu1 %vm373_vm4, %v305_v3  ;;  %v282_v9 = vmax.f32 %v187_v5, 0.0 }
  0xd4   :  { %v189_v6 = vpop.f32.mrf.mxu0  ;;  %1867 = vmatprep.mubr.msk.bf16.mxu1 %vm2187_vm2, %v2185_v0 }
  0xd5   :  { %v190_v7 = vadd.f32 %v2433_v56, %v189_v6 }
  0xd6   :  { %v1806_v8 = vpop.f32.mrf.mxu0 }
  0xd7   :  { %v283_v10 = vmax.f32 %v190_v7, 0.0 }
  0xd8   :  { %v194_v11 = vpop.f32.mrf.mxu0 }
  0xd9   :  { %v306_v12 = vpack.c.bf16 %v283_v10, %v282_v9  ;;  %v195_v14 = vadd.f32 %v2433_v56, %v194_v11 }
  0xda   :  { %v1809_v13 = vpop.f32.mrf.mxu0 }
  0xdb   :  { %1868 = vmatmul.mubr.msk.bf16.gmra.mxu1 %vm373_vm4, %v306_v12  ;;  %v284_v18 = vmax.f32 %v195_v14, 0.0 }
  0xdc   :  { %v197_v15 = vpop.f32.mrf.mxu0  ;;  %1871 = vmatprep.mubr.msk.bf16.mxu1 %vm2187_vm2, %v2185_v0 }
  0xdd   :  { %v198_v16 = vadd.f32 %v2433_v56, %v197_v15 }
  0xde   :  { %v1810_v17 = vpop.f32.mrf.mxu0 }
  0xdf   :  { %v285_v19 = vmax.f32 %v198_v16, 0.0 }
  0xe0   :  { %v202_v20 = vpop.f32.mrf.mxu0 }
  0xe1   :  { %v307_v21 = vpack.c.bf16 %v285_v19, %v284_v18  ;;  %v203_v23 = vadd.f32 %v2433_v56, %v202_v20 }
  0xe2   :  { %v1813_v22 = vpop.f32.mrf.mxu0 }
  0xe3   :  { %1872 = vmatmul.mubr.msk.bf16.gmra.mxu1 %vm373_vm4, %v307_v21  ;;  %v286_v27 = vmax.f32 %v203_v23, 0.0 }
  0xe4   :  { %v205_v24 = vpop.f32.mrf.mxu0  ;;  %1875 = vmatprep.mubr.msk.bf16.mxu1 %vm2187_vm2, %v2185_v0 }
  0xe5   :  { %v206_v25 = vadd.f32 %v2433_v56, %v205_v24 }
  0xe6   :  { %v1814_v26 = vpop.f32.mrf.mxu0 }
  0xe7   :  { %v287_v28 = vmax.f32 %v206_v25, 0.0 }
  0xe8   :  { %v210_v29 = vpop.f32.mrf.mxu0 }
  0xe9   :  { %v308_v30 = vpack.c.bf16 %v287_v28, %v286_v27  ;;  %v211_v32 = vadd.f32 %v2433_v56, %v210_v29 }
  0xea   :  { %v1817_v31 = vpop.f32.mrf.mxu0 }
  0xeb   :  { %1876 = vmatmul.mubr.msk.bf16.gmra.mxu1 %vm373_vm4, %v308_v30  ;;  %v288_v36 = vmax.f32 %v211_v32, 0.0 }
  0xec   :  { %v213_v33 = vpop.f32.mrf.mxu0  ;;  %1879 = vmatprep.mubr.msk.bf16.mxu1 %vm2187_vm2, %v2185_v0 }
  0xed   :  { %v214_v34 = vadd.f32 %v2433_v56, %v213_v33 }
  0xee   :  { %v1818_v35 = vpop.f32.mrf.mxu0 }
  0xef   :  { %v289_v37 = vmax.f32 %v214_v34, 0.0 }
  0xf0   :  { %v218_v38 = vpop.f32.mrf.mxu0 }
  0xf1   :  { %v309_v39 = vpack.c.bf16 %v289_v37, %v288_v36  ;;  %v219_v41 = vadd.f32 %v2433_v56, %v218_v38 }
  0xf2   :  { %v1821_v40 = vpop.f32.mrf.mxu0 }
  0xf3   :  { %1880 = vmatmul.mubr.msk.bf16.gmra.mxu1 %vm373_vm4, %v309_v39  ;;  %v290_v45 = vmax.f32 %v219_v41, 0.0 }
  0xf4   :  { %v221_v42 = vpop.f32.mrf.mxu0  ;;  %1883 = vmatprep.mubr.msk.bf16.mxu1 %vm2187_vm2, %v2185_v0 }
  0xf5   :  { %v222_v43 = vadd.f32 %v2433_v56, %v221_v42 }
  0xf6   :  { %v1822_v44 = vpop.f32.mrf.mxu0 }
  0xf7   :  { %v291_v46 = vmax.f32 %v222_v43, 0.0 }
  0xf8   :  { %v226_v47 = vpop.f32.mrf.mxu0 }
  0xf9   :  { %v310_v48 = vpack.c.bf16 %v291_v46, %v290_v45  ;;  %v227_v50 = vadd.f32 %v2433_v56, %v226_v47  ;;  %v2175_v47 = vld [vmem:[%s2946_s7 + $0x18] sm:$0xff]  }
  0xfa   :  { %v1825_v49 = vpop.f32.mrf.mxu0  ;;  %1980 = vmatpush3.bf16.msra.mxu1 %v2175_v47 }
  0xfb   :  { %1884 = vmatmul.mubr.msk.bf16.gmra.mxu1 %vm373_vm4, %v310_v48  ;;  %v292_v54 = vmax.f32 %v227_v50, 0.0  ;;  %1981 = vmatprep.subr.bf16.mxu1 %v2185_v0  ;;  %v2177_v48 = vld [vmem:[%s2946_s7 + $0x8] sm:$0xff]   ;;  %v2178_v49 = vld [vmem:[%s2946_s7] sm:$0xff]  }
  0xfc   :  { %v229_v51 = vpop.f32.mrf.mxu0  ;;  %1887 = vmatprep.mubr.msk.bf16.mxu1 %vm2187_vm2, %v2185_v0  ;;  %v2518_v50 = vld [vmem:[%s2947_s4] ss:$0 sm:$0xff] }
  0xfd   :  { %v230_v52 = vadd.f32 %v2433_v56, %v229_v51 }
  0xfe   :  { %v1826_v53 = vpop.f32.mrf.mxu0 }
  0xff   :  { %v293_v55 = vmax.f32 %v230_v52, 0.0 }
 0x100   :  { %v234_v57 = vpop.f32.mrf.mxu0 }
 0x101   :  { %v311_v58 = vpack.c.bf16 %v293_v55, %v292_v54  ;;  %v235_v60 = vadd.f32 %v2433_v56, %v234_v57 }
 0x102   :  { %v1829_v59 = vpop.f32.mrf.mxu0 }
 0x103   :  { %1888 = vmatmul.mubr.msk.bf16.gmra.mxu1 %vm373_vm4, %v311_v58  ;;  %v294_v1 = vmax.f32 %v235_v60, 0.0 }
 0x104   :  { %v237_v61 = vpop.f32.mrf.mxu0  ;;  %1891 = vmatprep.mubr.msk.bf16.mxu1 %vm2187_vm2, %v2185_v0 }
 0x105   :  { %v238_v62 = vadd.f32 %v2433_v56, %v237_v61 }
 0x106   :  { %v1830_v63 = vpop.f32.mrf.mxu0 }
 0x107   :  { %v295_v2 = vmax.f32 %v238_v62, 0.0 }
 0x108   :  { %v242_v3 = vpop.f32.mrf.mxu0 }
 0x109   :  { %v312_v4 = vpack.c.bf16 %v295_v2, %v294_v1  ;;  %v243_v6 = vadd.f32 %v2433_v56, %v242_v3 }
 0x10a   :  { %v1833_v5 = vpop.f32.mrf.mxu0 }
 0x10b   :  { %1892 = vmatmul.mubr.msk.bf16.gmra.mxu1 %vm373_vm4, %v312_v4  ;;  %v296_v10 = vmax.f32 %v243_v6, 0.0 }
 0x10c   :  { %v245_v7 = vpop.f32.mrf.mxu0  ;;  %1895 = vmatprep.mubr.msk.bf16.mxu1 %vm2187_vm2, %v2185_v0 }
 0x10d   :  { %v246_v8 = vadd.f32 %v2433_v56, %v245_v7 }
 0x10e   :  { %v1834_v9 = vpop.f32.mrf.mxu0 }
 0x10f   :  { %v297_v11 = vmax.f32 %v246_v8, 0.0 }
 0x110   :  { %v250_v12 = vpop.f32.mrf.mxu0 }
 0x111   :  { %v313_v13 = vpack.c.bf16 %v297_v11, %v296_v10  ;;  %v251_v15 = vadd.f32 %v2433_v56, %v250_v12 }
 0x112   :  { %v1837_v14 = vpop.f32.mrf.mxu0 }
 0x113   :  { %1896 = vmatmul.mubr.msk.bf16.gmra.mxu1 %vm373_vm4, %v313_v13  ;;  %v298_v19 = vmax.f32 %v251_v15, 0.0 }
 0x114   :  { %v253_v16 = vpop.f32.mrf.mxu0  ;;  %1899 = vmatprep.mubr.msk.bf16.mxu1 %vm2187_vm2, %v2185_v0 }
 0x115   :  { %v254_v17 = vadd.f32 %v2433_v56, %v253_v16 }
 0x116   :  { %v1838_v18 = vpop.f32.mrf.mxu0 }
 0x117   :  { %v299_v20 = vmax.f32 %v254_v17, 0.0 }
 0x118   :  { %v258_v21 = vpop.f32.mrf.mxu0 }
 0x119   :  { %v314_v22 = vpack.c.bf16 %v299_v20, %v298_v19  ;;  %v259_v24 = vadd.f32 %v2433_v56, %v258_v21 }
 0x11a   :  { %v1841_v23 = vpop.f32.mrf.mxu0 }
 0x11b   :  { %1900 = vmatmul.mubr.msk.bf16.gmra.mxu1 %vm373_vm4, %v314_v22  ;;  %v300_v28 = vmax.f32 %v259_v24, 0.0 }
 0x11c   :  { %v261_v25 = vpop.f32.mrf.mxu0  ;;  %1903 = vmatprep.mubr.msk.bf16.mxu1 %vm2187_vm2, %v2185_v0 }
 0x11d   :  { %v262_v26 = vadd.f32 %v2433_v56, %v261_v25 }
 0x11e   :  { %v1842_v27 = vpop.f32.mrf.mxu0 }
 0x11f   :  { %v301_v29 = vmax.f32 %v262_v26, 0.0 }
 0x120   :  { %v266_v30 = vpop.f32.mrf.mxu0 }
 0x121   :  { %v315_v31 = vpack.c.bf16 %v301_v29, %v300_v28  ;;  %v267_v33 = vadd.f32 %v2433_v56, %v266_v30 }
 0x122   :  { %v1845_v32 = vpop.f32.mrf.mxu0 }
 0x123   :  { %1904 = vmatmul.mubr.msk.bf16.gmra.mxu1 %vm373_vm4, %v315_v31  ;;  %v302_v37 = vmax.f32 %v267_v33, 0.0 }
 0x124   :  { %v269_v34 = vpop.f32.mrf.mxu0  ;;  %1907 = vmatprep.mubr.msk.bf16.mxu1 %vm2187_vm2, %v2185_v0 }
 0x125   :  { %v270_v35 = vadd.f32 %v2433_v56, %v269_v34 }
 0x126   :  { %v1846_v36 = vpop.f32.mrf.mxu0 }
 0x127   :  { %v303_v38 = vmax.f32 %v270_v35, 0.0 }
 0x128   :  { %v274_v39 = vpop.f32.mrf.mxu0 }
 0x129   :  { %v316_v40 = vpack.c.bf16 %v303_v38, %v302_v37  ;;  %v275_v41 = vadd.f32 %v2433_v56, %v274_v39  ;;  %v2176_v56 = vld [vmem:[%s2946_s7 + $0x10] sm:$0xff]  }
 0x12a   :  { %v1849_v42 = vpop.f32.mrf.mxu0  ;;  %1982 = vmatpush3.bf16.msra.mxu1 %v2176_v56 }
 0x12b   :  { %1908 = vmatmul.mubr.msk.bf16.gmra.mxu1 %vm373_vm4, %v316_v40  ;;  %v304_v43 = vmax.f32 %v275_v41, 0.0  ;;  %1983 = vmatprep.subr.bf16.mxu1 %v2185_v0 }
 0x12c   :  { %v277_v44 = vpop.f32.mrf.mxu0  ;;  %1911 = vmatprep.mubr.msk.bf16.mxu1 %vm2187_vm2, %v2185_v0 }
 0x12d   :  { %v317_v46 = vpack.c.bf16 %v304_v43, %v304_v43 }
 0x12e   :  { %v1850_v45 = vpop.f32.mrf.mxu0  ;;  %1984 = vmatpush3.bf16.msra.mxu1 %v2177_v48 }
 0x12f   :  { %1985 = vmatprep.subr.bf16.mxu1 %v2185_v0 }
 0x132   :  { %1986 = vmatpush3.bf16.msra.mxu1 %v2178_v49 }
 0x133   :  { %1912 = vmatmul.mubr.msk.bf16.gmra.mxu1 %vm373_vm4, %v317_v46  ;;  %2155 = vmatprep.subr.bf16.mxu1 %v2185_v0 }
 0x134   :  { %1987 = vmatprep.mubr.msk.bf16.mxu1 %vm2187_vm2, %v2185_v0 }
 0x193   :  { %v447_v51 = vpop.f32.mrf.mxu1 }
 0x194   :  { %v448_v53 = vadd.f32 %v2518_v50, %v447_v51 }
 0x195   :  { %v1865_v52 = vpop.f32.mrf.mxu1 }
 0x196   :  { %v549_v58 = vmax.f32 %v448_v53, 0.0 }
 0x197   :  { %v450_v54 = vpop.f32.mrf.mxu1 }
 0x198   :  { %v451_v55 = vadd.f32 %v2518_v50, %v450_v54 }
 0x199   :  { %v1866_v57 = vpop.f32.mrf.mxu1 }
 0x19a   :  { %v550_v59 = vmax.f32 %v451_v55, 0.0 }
 0x19b   :  { %v455_v60 = vpop.f32.mrf.mxu1 }
 0x19c   :  { %v574_v61 = vpack.c.bf16 %v550_v59, %v549_v58  ;;  %v456_v63 = vadd.f32 %v2518_v50, %v455_v60 }
 0x19d   :  { %v1869_v62 = vpop.f32.mrf.mxu1 }
 0x19e   :  { %1928 = vmatmul.mubr.msk.bf16.vlgmr.msra.gmra.mxu0 %vm373_vm4, %v574_v61  ;;  %v551_v4 = vmax.f32 %v456_v63, 0.0 }
 0x19f   :  { %v458_v1 = vpop.f32.mrf.mxu1  ;;  %1931 = vmatprep.mubr.msk.bf16.mxu0 %vm2187_vm2, %v2185_v0 }
 0x1a0   :  { %v459_v2 = vadd.f32 %v2518_v50, %v458_v1 }
 0x1a1   :  { %v1870_v3 = vpop.f32.mrf.mxu1 }
 0x1a2   :  { %v552_v5 = vmax.f32 %v459_v2, 0.0 }
 0x1a3   :  { %v463_v6 = vpop.f32.mrf.mxu1 }
 0x1a4   :  { %v575_v7 = vpack.c.bf16 %v552_v5, %v551_v4  ;;  %v464_v9 = vadd.f32 %v2518_v50, %v463_v6 }
 0x1a5   :  { %v1873_v8 = vpop.f32.mrf.mxu1 }
 0x1a6   :  { %1932 = vmatmul.mubr.msk.bf16.gmra.mxu0 %vm373_vm4, %v575_v7  ;;  %v553_v13 = vmax.f32 %v464_v9, 0.0 }
 0x1a7   :  { %v466_v10 = vpop.f32.mrf.mxu1  ;;  %1935 = vmatprep.mubr.msk.bf16.mxu0 %vm2187_vm2, %v2185_v0 }
 0x1a8   :  { %v467_v11 = vadd.f32 %v2518_v50, %v466_v10 }
 0x1a9   :  { %v1874_v12 = vpop.f32.mrf.mxu1 }
 0x1aa   :  { %v554_v14 = vmax.f32 %v467_v11, 0.0 }
 0x1ab   :  { %v471_v15 = vpop.f32.mrf.mxu1 }
 0x1ac   :  { %v576_v16 = vpack.c.bf16 %v554_v14, %v553_v13  ;;  %v472_v18 = vadd.f32 %v2518_v50, %v471_v15 }
 0x1ad   :  { %v1877_v17 = vpop.f32.mrf.mxu1 }
 0x1ae   :  { %1936 = vmatmul.mubr.msk.bf16.gmra.mxu0 %vm373_vm4, %v576_v16  ;;  %v555_v22 = vmax.f32 %v472_v18, 0.0 }
 0x1af   :  { %v474_v19 = vpop.f32.mrf.mxu1  ;;  %1939 = vmatprep.mubr.msk.bf16.mxu0 %vm2187_vm2, %v2185_v0 }
 0x1b0   :  { %v475_v20 = vadd.f32 %v2518_v50, %v474_v19 }
 0x1b1   :  { %v1878_v21 = vpop.f32.mrf.mxu1 }
 0x1b2   :  { %v556_v23 = vmax.f32 %v475_v20, 0.0 }
 0x1b3   :  { %v479_v24 = vpop.f32.mrf.mxu1 }
 0x1b4   :  { %v577_v25 = vpack.c.bf16 %v556_v23, %v555_v22  ;;  %v480_v27 = vadd.f32 %v2518_v50, %v479_v24 }
 0x1b5   :  { %v1881_v26 = vpop.f32.mrf.mxu1 }
 0x1b6   :  { %1940 = vmatmul.mubr.msk.bf16.gmra.mxu0 %vm373_vm4, %v577_v25  ;;  %v557_v31 = vmax.f32 %v480_v27, 0.0 }
 0x1b7   :  { %v482_v28 = vpop.f32.mrf.mxu1  ;;  %1943 = vmatprep.mubr.msk.bf16.mxu0 %vm2187_vm2, %v2185_v0 }
 0x1b8   :  { %v483_v29 = vadd.f32 %v2518_v50, %v482_v28 }
 0x1b9   :  { %v1882_v30 = vpop.f32.mrf.mxu1 }
 0x1ba   :  { %v558_v32 = vmax.f32 %v483_v29, 0.0 }
 0x1bb   :  { %v487_v33 = vpop.f32.mrf.mxu1 }
 0x1bc   :  { %v578_v34 = vpack.c.bf16 %v558_v32, %v557_v31  ;;  %v488_v36 = vadd.f32 %v2518_v50, %v487_v33 }
 0x1bd   :  { %v1885_v35 = vpop.f32.mrf.mxu1 }
 0x1be   :  { %1944 = vmatmul.mubr.msk.bf16.gmra.mxu0 %vm373_vm4, %v578_v34  ;;  %v559_v40 = vmax.f32 %v488_v36, 0.0 }
 0x1bf   :  { %v490_v37 = vpop.f32.mrf.mxu1  ;;  %1947 = vmatprep.mubr.msk.bf16.mxu0 %vm2187_vm2, %v2185_v0 }
 0x1c0   :  { %v491_v38 = vadd.f32 %v2518_v50, %v490_v37 }
 0x1c1   :  { %v1886_v39 = vpop.f32.mrf.mxu1 }
 0x1c2   :  { %v560_v41 = vmax.f32 %v491_v38, 0.0 }
 0x1c3   :  { %v495_v42 = vpop.f32.mrf.mxu1 }
 0x1c4   :  { %v579_v43 = vpack.c.bf16 %v560_v41, %v559_v40  ;;  %v496_v45 = vadd.f32 %v2518_v50, %v495_v42  ;;  %v2179_v42 = vld [vmem:[%s2948_s9 + $0x18] sm:$0xff]  }
 0x1c5   :  { %v1889_v44 = vpop.f32.mrf.mxu1  ;;  %2040 = vmatpush3.bf16.msra.mxu0 %v2179_v42 }
 0x1c6   :  { %1948 = vmatmul.mubr.msk.bf16.gmra.mxu0 %vm373_vm4, %v579_v43  ;;  %v561_v48 = vmax.f32 %v496_v45, 0.0  ;;  %2041 = vmatprep.subr.bf16.mxu0 %v2185_v0  ;;  %v2181_v43 = vld [vmem:[%s2948_s9 + $0x8] sm:$0xff]   ;;  %v2182_v44 = vld [vmem:[%s2948_s9] sm:$0xff]  }
 0x1c7   :  { %v498_v46 = vpop.f32.mrf.mxu1  ;;  %1951 = vmatprep.mubr.msk.bf16.mxu0 %vm2187_vm2, %v2185_v0  ;;  %v2603_v45 = vld [vmem:[%s2949_s6] ss:$0 sm:$0xff] }
 0x1c8   :  { %v499_v47 = vadd.f32 %v2518_v50, %v498_v46 }
 0x1c9   :  { %v1890_v56 = vpop.f32.mrf.mxu1 }
 0x1ca   :  { %v562_v49 = vmax.f32 %v499_v47, 0.0 }
 0x1cb   :  { %v503_v51 = vpop.f32.mrf.mxu1 }
 0x1cc   :  { %v580_v52 = vpack.c.bf16 %v562_v49, %v561_v48  ;;  %v504_v54 = vadd.f32 %v2518_v50, %v503_v51 }
 0x1cd   :  { %v1893_v53 = vpop.f32.mrf.mxu1 }
 0x1ce   :  { %1952 = vmatmul.mubr.msk.bf16.gmra.mxu0 %vm373_vm4, %v580_v52  ;;  %v563_v59 = vmax.f32 %v504_v54, 0.0 }
 0x1cf   :  { %v506_v55 = vpop.f32.mrf.mxu1  ;;  %1955 = vmatprep.mubr.msk.bf16.mxu0 %vm2187_vm2, %v2185_v0 }
 0x1d0   :  { %v507_v57 = vadd.f32 %v2518_v50, %v506_v55 }
 0x1d1   :  { %v1894_v58 = vpop.f32.mrf.mxu1 }
 0x1d2   :  { %v564_v60 = vmax.f32 %v507_v57, 0.0 }
 0x1d3   :  { %v511_v61 = vpop.f32.mrf.mxu1 }
 0x1d4   :  { %v581_v62 = vpack.c.bf16 %v564_v60, %v563_v59  ;;  %v512_v1 = vadd.f32 %v2518_v50, %v511_v61 }
 0x1d5   :  { %v1897_v63 = vpop.f32.mrf.mxu1 }
 0x1d6   :  { %1956 = vmatmul.mubr.msk.bf16.gmra.mxu0 %vm373_vm4, %v581_v62  ;;  %v565_v5 = vmax.f32 %v512_v1, 0.0 }
 0x1d7   :  { %v514_v2 = vpop.f32.mrf.mxu1  ;;  %1959 = vmatprep.mubr.msk.bf16.mxu0 %vm2187_vm2, %v2185_v0 }
 0x1d8   :  { %v515_v3 = vadd.f32 %v2518_v50, %v514_v2 }
 0x1d9   :  { %v1898_v4 = vpop.f32.mrf.mxu1 }
 0x1da   :  { %v566_v6 = vmax.f32 %v515_v3, 0.0 }
 0x1db   :  { %v519_v7 = vpop.f32.mrf.mxu1 }
 0x1dc   :  { %v582_v8 = vpack.c.bf16 %v566_v6, %v565_v5  ;;  %v520_v10 = vadd.f32 %v2518_v50, %v519_v7 }
 0x1dd   :  { %v1901_v9 = vpop.f32.mrf.mxu1 }
 0x1de   :  { %1960 = vmatmul.mubr.msk.bf16.gmra.mxu0 %vm373_vm4, %v582_v8  ;;  %v567_v14 = vmax.f32 %v520_v10, 0.0 }
 0x1df   :  { %v522_v11 = vpop.f32.mrf.mxu1  ;;  %1963 = vmatprep.mubr.msk.bf16.mxu0 %vm2187_vm2, %v2185_v0 }
 0x1e0   :  { %v523_v12 = vadd.f32 %v2518_v50, %v522_v11 }
 0x1e1   :  { %v1902_v13 = vpop.f32.mrf.mxu1 }
 0x1e2   :  { %v568_v15 = vmax.f32 %v523_v12, 0.0 }
 0x1e3   :  { %v527_v16 = vpop.f32.mrf.mxu1 }
 0x1e4   :  { %v583_v17 = vpack.c.bf16 %v568_v15, %v567_v14  ;;  %v528_v19 = vadd.f32 %v2518_v50, %v527_v16 }
 0x1e5   :  { %v1905_v18 = vpop.f32.mrf.mxu1 }
 0x1e6   :  { %1964 = vmatmul.mubr.msk.bf16.gmra.mxu0 %vm373_vm4, %v583_v17  ;;  %v569_v23 = vmax.f32 %v528_v19, 0.0 }
 0x1e7   :  { %v530_v20 = vpop.f32.mrf.mxu1  ;;  %1967 = vmatprep.mubr.msk.bf16.mxu0 %vm2187_vm2, %v2185_v0 }
 0x1e8   :  { %v531_v21 = vadd.f32 %v2518_v50, %v530_v20 }
 0x1e9   :  { %v1906_v22 = vpop.f32.mrf.mxu1 }
 0x1ea   :  { %v570_v24 = vmax.f32 %v531_v21, 0.0 }
 0x1eb   :  { %v535_v25 = vpop.f32.mrf.mxu1 }
 0x1ec   :  { %v584_v26 = vpack.c.bf16 %v570_v24, %v569_v23  ;;  %v536_v28 = vadd.f32 %v2518_v50, %v535_v25 }
 0x1ed   :  { %v1909_v27 = vpop.f32.mrf.mxu1 }
 0x1ee   :  { %1968 = vmatmul.mubr.msk.bf16.gmra.mxu0 %vm373_vm4, %v584_v26  ;;  %v571_v32 = vmax.f32 %v536_v28, 0.0 }
 0x1ef   :  { %v538_v29 = vpop.f32.mrf.mxu1  ;;  %1971 = vmatprep.mubr.msk.bf16.mxu0 %vm2187_vm2, %v2185_v0 }
 0x1f0   :  { %v539_v30 = vadd.f32 %v2518_v50, %v538_v29 }
 0x1f1   :  { %v1910_v31 = vpop.f32.mrf.mxu1 }
 0x1f2   :  { %v572_v33 = vmax.f32 %v539_v30, 0.0 }
 0x1f3   :  { %v543_v34 = vpop.f32.mrf.mxu1 }
 0x1f4   :  { %v585_v35 = vpack.c.bf16 %v572_v33, %v571_v32  ;;  %v544_v36 = vadd.f32 %v2518_v50, %v543_v34  ;;  %v2180_v50 = vld [vmem:[%s2948_s9 + $0x10] sm:$0xff]  }
 0x1f5   :  { %v1913_v37 = vpop.f32.mrf.mxu1  ;;  %2042 = vmatpush3.bf16.msra.mxu0 %v2180_v50 }
 0x1f6   :  { %1972 = vmatmul.mubr.msk.bf16.gmra.mxu0 %vm373_vm4, %v585_v35  ;;  %v573_v38 = vmax.f32 %v544_v36, 0.0  ;;  %2043 = vmatprep.subr.bf16.mxu0 %v2185_v0 }
 0x1f7   :  { %v546_v39 = vpop.f32.mrf.mxu1  ;;  %1975 = vmatprep.mubr.msk.bf16.mxu0 %vm2187_vm2, %v2185_v0 }
 0x1f8   :  { %v586_v41 = vpack.c.bf16 %v573_v38, %v573_v38 }
 0x1f9   :  { %v1914_v40 = vpop.f32.mrf.mxu1  ;;  %2044 = vmatpush3.bf16.msra.mxu0 %v2181_v43 }
 0x1fa   :  { %2045 = vmatprep.subr.bf16.mxu0 %v2185_v0 }
 0x1fd   :  { %2046 = vmatpush3.bf16.msra.mxu0 %v2182_v44 }
 0x1fe   :  { %1976 = vmatmul.mubr.msk.bf16.gmra.mxu0 %vm373_vm4, %v586_v41  ;;  %2099 = vmatprep.subr.bf16.mxu0 %v2185_v0 }
 0x1ff   :  { %2047 = vmatprep.mubr.msk.bf16.mxu0 %vm2187_vm2, %v2185_v0 }
 0x25e   :  { %v715_v46 = vpop.f32.mrf.mxu0 }
 0x25f   :  { %v716_v56 = vadd.f32 %v2603_v45, %v715_v46 }
 0x260   :  { %v1929_v47 = vpop.f32.mrf.mxu0 }
 0x261   :  { %v817_v52 = vmax.f32 %v716_v56, 0.0 }
 0x262   :  { %v718_v48 = vpop.f32.mrf.mxu0 }
 0x263   :  { %v719_v49 = vadd.f32 %v2603_v45, %v718_v48 }
 0x264   :  { %v1930_v51 = vpop.f32.mrf.mxu0 }
 0x265   :  { %v818_v53 = vmax.f32 %v719_v49, 0.0 }
 0x266   :  { %v723_v54 = vpop.f32.mrf.mxu0 }
 0x267   :  { %v842_v55 = vpack.c.bf16 %v818_v53, %v817_v52  ;;  %v724_v58 = vadd.f32 %v2603_v45, %v723_v54 }
 0x268   :  { %v1933_v57 = vpop.f32.mrf.mxu0 }
 0x269   :  { %1988 = vmatmul.mubr.msk.bf16.vlgmr.msra.gmra.mxu1 %vm894_vm5, %v842_v55  ;;  %v819_v62 = vmax.f32 %v724_v58, 0.0 }
 0x26a   :  { %v726_v59 = vpop.f32.mrf.mxu0  ;;  %1991 = vmatprep.mubr.msk.bf16.mxu1 %vm2187_vm2, %v2185_v0 }
 0x26b   :  { %v727_v60 = vadd.f32 %v2603_v45, %v726_v59 }
 0x26c   :  { %v1934_v61 = vpop.f32.mrf.mxu0 }
 0x26d   :  { %v820_v63 = vmax.f32 %v727_v60, 0.0 }
 0x26e   :  { %v731_v1 = vpop.f32.mrf.mxu0 }
 0x26f   :  { %v843_v2 = vpack.c.bf16 %v820_v63, %v819_v62  ;;  %v732_v4 = vadd.f32 %v2603_v45, %v731_v1 }
 0x270   :  { %v1937_v3 = vpop.f32.mrf.mxu0 }
 0x271   :  { %1992 = vmatmul.mubr.msk.bf16.gmra.mxu1 %vm894_vm5, %v843_v2  ;;  %v821_v8 = vmax.f32 %v732_v4, 0.0 }
 0x272   :  { %v734_v5 = vpop.f32.mrf.mxu0  ;;  %1995 = vmatprep.mubr.msk.bf16.mxu1 %vm2187_vm2, %v2185_v0 }
 0x273   :  { %v735_v6 = vadd.f32 %v2603_v45, %v734_v5 }
 0x274   :  { %v1938_v7 = vpop.f32.mrf.mxu0 }
 0x275   :  { %v822_v9 = vmax.f32 %v735_v6, 0.0 }
 0x276   :  { %v739_v10 = vpop.f32.mrf.mxu0 }
 0x277   :  { %v844_v11 = vpack.c.bf16 %v822_v9, %v821_v8  ;;  %v740_v13 = vadd.f32 %v2603_v45, %v739_v10 }
 0x278   :  { %v1941_v12 = vpop.f32.mrf.mxu0 }
 0x279   :  { %1996 = vmatmul.mubr.msk.bf16.gmra.mxu1 %vm894_vm5, %v844_v11  ;;  %v823_v17 = vmax.f32 %v740_v13, 0.0 }
 0x27a   :  { %v742_v14 = vpop.f32.mrf.mxu0  ;;  %1999 = vmatprep.mubr.msk.bf16.mxu1 %vm2187_vm2, %v2185_v0 }
 0x27b   :  { %v743_v15 = vadd.f32 %v2603_v45, %v742_v14 }
 0x27c   :  { %v1942_v16 = vpop.f32.mrf.mxu0 }
 0x27d   :  { %v824_v18 = vmax.f32 %v743_v15, 0.0 }
 0x27e   :  { %v747_v19 = vpop.f32.mrf.mxu0 }
 0x27f   :  { %v845_v20 = vpack.c.bf16 %v824_v18, %v823_v17  ;;  %v748_v22 = vadd.f32 %v2603_v45, %v747_v19 }
 0x280   :  { %v1945_v21 = vpop.f32.mrf.mxu0 }
 0x281   :  { %2000 = vmatmul.mubr.msk.bf16.gmra.mxu1 %vm894_vm5, %v845_v20  ;;  %v825_v26 = vmax.f32 %v748_v22, 0.0 }
 0x282   :  { %v750_v23 = vpop.f32.mrf.mxu0  ;;  %2003 = vmatprep.mubr.msk.bf16.mxu1 %vm2187_vm2, %v2185_v0 }
 0x283   :  { %v751_v24 = vadd.f32 %v2603_v45, %v750_v23 }
 0x284   :  { %v1946_v25 = vpop.f32.mrf.mxu0 }
 0x285   :  { %v826_v27 = vmax.f32 %v751_v24, 0.0 }
 0x286   :  { %v755_v28 = vpop.f32.mrf.mxu0 }
 0x287   :  { %v846_v29 = vpack.c.bf16 %v826_v27, %v825_v26  ;;  %v756_v31 = vadd.f32 %v2603_v45, %v755_v28 }
 0x288   :  { %v1949_v30 = vpop.f32.mrf.mxu0 }
 0x289   :  { %2004 = vmatmul.mubr.msk.bf16.gmra.mxu1 %vm894_vm5, %v846_v29  ;;  %v827_v35 = vmax.f32 %v756_v31, 0.0 }
 0x28a   :  { %v758_v32 = vpop.f32.mrf.mxu0  ;;  %2007 = vmatprep.mubr.msk.bf16.mxu1 %vm2187_vm2, %v2185_v0 }
 0x28b   :  { %v759_v33 = vadd.f32 %v2603_v45, %v758_v32 }
 0x28c   :  { %v1950_v34 = vpop.f32.mrf.mxu0 }
 0x28d   :  { %v828_v36 = vmax.f32 %v759_v33, 0.0 }
 0x28e   :  { %v763_v37 = vpop.f32.mrf.mxu0 }
 0x28f   :  { %v847_v38 = vpack.c.bf16 %v828_v36, %v827_v35  ;;  %v764_v40 = vadd.f32 %v2603_v45, %v763_v37  ;;  %v2183_v37 = vld [vmem:[%s2950_s11 + $0x8] sm:$0xff]  }
 0x290   :  { %v1953_v39 = vpop.f32.mrf.mxu0  ;;  %2157 = vmatpush3.bf16.msra.mxu1 %v2183_v37 }
 0x291   :  { %2008 = vmatmul.mubr.msk.bf16.gmra.mxu1 %vm894_vm5, %v847_v38  ;;  %v829_v43 = vmax.f32 %v764_v40, 0.0  ;;  %2156 = vmatprep.subr.bf16.mxu1 %v2185_v0  ;;  %v2679_v38 = vld [vmem:[%s2951_s8] ss:$0 sm:$0xff] }
 0x292   :  { %v766_v41 = vpop.f32.mrf.mxu0  ;;  %2011 = vmatprep.mubr.msk.bf16.mxu1 %vm2187_vm2, %v2185_v0 }
 0x293   :  { %v767_v42 = vadd.f32 %v2603_v45, %v766_v41 }
 0x294   :  { %v1954_v50 = vpop.f32.mrf.mxu0 }
 0x295   :  { %v830_v44 = vmax.f32 %v767_v42, 0.0 }
 0x296   :  { %v771_v46 = vpop.f32.mrf.mxu0 }
 0x297   :  { %v848_v47 = vpack.c.bf16 %v830_v44, %v829_v43  ;;  %v772_v48 = vadd.f32 %v2603_v45, %v771_v46 }
 0x298   :  { %v1957_v56 = vpop.f32.mrf.mxu0 }
 0x299   :  { %2012 = vmatmul.mubr.msk.bf16.gmra.mxu1 %vm894_vm5, %v848_v47  ;;  %v831_v53 = vmax.f32 %v772_v48, 0.0 }
 0x29a   :  { %v774_v49 = vpop.f32.mrf.mxu0  ;;  %2015 = vmatprep.mubr.msk.bf16.mxu1 %vm2187_vm2, %v2185_v0 }
 0x29b   :  { %v775_v51 = vadd.f32 %v2603_v45, %v774_v49 }
 0x29c   :  { %v1958_v52 = vpop.f32.mrf.mxu0 }
 0x29d   :  { %v832_v54 = vmax.f32 %v775_v51, 0.0 }
 0x29e   :  { %v779_v55 = vpop.f32.mrf.mxu0 }
 0x29f   :  { %v849_v57 = vpack.c.bf16 %v832_v54, %v831_v53  ;;  %v780_v59 = vadd.f32 %v2603_v45, %v779_v55 }
 0x2a0   :  { %v1961_v58 = vpop.f32.mrf.mxu0 }
 0x2a1   :  { %2016 = vmatmul.mubr.msk.bf16.gmra.mxu1 %vm894_vm5, %v849_v57  ;;  %v833_v63 = vmax.f32 %v780_v59, 0.0 }
 0x2a2   :  { %v782_v60 = vpop.f32.mrf.mxu0  ;;  %2019 = vmatprep.mubr.msk.bf16.mxu1 %vm2187_vm2, %v2185_v0 }
 0x2a3   :  { %v783_v61 = vadd.f32 %v2603_v45, %v782_v60 }
 0x2a4   :  { %v1962_v62 = vpop.f32.mrf.mxu0 }
 0x2a5   :  { %v834_v1 = vmax.f32 %v783_v61, 0.0 }
 0x2a6   :  { %v787_v2 = vpop.f32.mrf.mxu0 }
 0x2a7   :  { %v850_v3 = vpack.c.bf16 %v834_v1, %v833_v63  ;;  %v788_v5 = vadd.f32 %v2603_v45, %v787_v2 }
 0x2a8   :  { %v1965_v4 = vpop.f32.mrf.mxu0 }
 0x2a9   :  { %2020 = vmatmul.mubr.msk.bf16.gmra.mxu1 %vm894_vm5, %v850_v3  ;;  %v835_v9 = vmax.f32 %v788_v5, 0.0 }
 0x2aa   :  { %v790_v6 = vpop.f32.mrf.mxu0  ;;  %2023 = vmatprep.mubr.msk.bf16.mxu1 %vm2187_vm2, %v2185_v0 }
 0x2ab   :  { %v791_v7 = vadd.f32 %v2603_v45, %v790_v6 }
 0x2ac   :  { %v1966_v8 = vpop.f32.mrf.mxu0 }
 0x2ad   :  { %v836_v10 = vmax.f32 %v791_v7, 0.0 }
 0x2ae   :  { %v795_v11 = vpop.f32.mrf.mxu0 }
 0x2af   :  { %v851_v12 = vpack.c.bf16 %v836_v10, %v835_v9  ;;  %v796_v14 = vadd.f32 %v2603_v45, %v795_v11 }
 0x2b0   :  { %v1969_v13 = vpop.f32.mrf.mxu0 }
 0x2b1   :  { %2024 = vmatmul.mubr.msk.bf16.gmra.mxu1 %vm894_vm5, %v851_v12  ;;  %v837_v18 = vmax.f32 %v796_v14, 0.0 }
 0x2b2   :  { %v798_v15 = vpop.f32.mrf.mxu0  ;;  %2027 = vmatprep.mubr.msk.bf16.mxu1 %vm2187_vm2, %v2185_v0 }
 0x2b3   :  { %v799_v16 = vadd.f32 %v2603_v45, %v798_v15 }
 0x2b4   :  { %v1970_v17 = vpop.f32.mrf.mxu0 }
 0x2b5   :  { %v838_v19 = vmax.f32 %v799_v16, 0.0 }
 0x2b6   :  { %v803_v20 = vpop.f32.mrf.mxu0 }
 0x2b7   :  { %v852_v21 = vpack.c.bf16 %v838_v19, %v837_v18  ;;  %v804_v23 = vadd.f32 %v2603_v45, %v803_v20 }
 0x2b8   :  { %v1973_v22 = vpop.f32.mrf.mxu0 }
 0x2b9   :  { %2028 = vmatmul.mubr.msk.bf16.gmra.mxu1 %vm894_vm5, %v852_v21  ;;  %v839_v27 = vmax.f32 %v804_v23, 0.0 }
 0x2ba   :  { %v806_v24 = vpop.f32.mrf.mxu0  ;;  %2031 = vmatprep.mubr.msk.bf16.mxu1 %vm2187_vm2, %v2185_v0 }
 0x2bb   :  { %v807_v25 = vadd.f32 %v2603_v45, %v806_v24 }
 0x2bc   :  { %v1974_v26 = vpop.f32.mrf.mxu0 }
 0x2bd   :  { %v840_v28 = vmax.f32 %v807_v25, 0.0 }
 0x2be   :  { %v811_v29 = vpop.f32.mrf.mxu0 }
 0x2bf   :  { %v853_v30 = vpack.c.bf16 %v840_v28, %v839_v27  ;;  %v812_v31 = vadd.f32 %v2603_v45, %v811_v29  ;;  %v2184_v45 = vld [vmem:[%s2950_s11] sm:$0xff]  }
 0x2c0   :  { %v1977_v32 = vpop.f32.mrf.mxu0  ;;  %2158 = vmatpush3.bf16.msra.mxu1 %v2184_v45 }
 0x2c1   :  { %2032 = vmatmul.mubr.msk.bf16.gmra.mxu1 %vm894_vm5, %v853_v30  ;;  %v841_v33 = vmax.f32 %v812_v31, 0.0 }
 0x2c2   :  { %v814_v34 = vpop.f32.mrf.mxu0  ;;  %2035 = vmatprep.mubr.msk.bf16.mxu1 %vm2187_vm2, %v2185_v0 }
 0x2c3   :  { %v854_v36 = vpack.c.bf16 %v841_v33, %v841_v33 }
 0x2c4   :  { %v1978_v35 = vpop.f32.mrf.mxu0 }
 0x2c9   :  { %2036 = vmatmul.mubr.msk.bf16.gmra.mxu1 %vm894_vm5, %v854_v36 }
 0x2ca   :  { %2107 = vmatprep.mubr.msk.bf16.mxu1 %vm2187_vm2, %v2185_v0 }
 0x329   :  { %v968_v39 = vpop.f32.mrf.mxu1 }
 0x32a   :  { %v969_v41 = vadd.f32 %v2679_v38, %v968_v39 }
 0x32b   :  { %v1989_v40 = vpop.f32.mrf.mxu1 }
 0x32c   :  { %v1070_v44 = vmax.f32 %v969_v41, 0.0 }
 0x32d   :  { %v971_v42 = vpop.f32.mrf.mxu1 }
 0x32e   :  { %v972_v50 = vadd.f32 %v2679_v38, %v971_v42 }
 0x32f   :  { %v1990_v43 = vpop.f32.mrf.mxu1 }
 0x330   :  { %v1071_v46 = vmax.f32 %v972_v50, 0.0 }
 0x331   :  { %v976_v47 = vpop.f32.mrf.mxu1 }
 0x332   :  { %v1095_v56 = vpack.c.bf16 %v1071_v46, %v1070_v44  ;;  %v977_v49 = vadd.f32 %v2679_v38, %v976_v47 }
 0x333   :  { %v1993_v48 = vpop.f32.mrf.mxu1 }
 0x334   :  { %2048 = vmatmul.mubr.msk.bf16.vlgmr.msra.gmra.mxu0 %vm894_vm5, %v1095_v56  ;;  %v1072_v54 = vmax.f32 %v977_v49, 0.0 }
 0x335   :  { %v979_v51 = vpop.f32.mrf.mxu1  ;;  %2051 = vmatprep.mubr.msk.bf16.mxu0 %vm2187_vm2, %v2185_v0  ;;  %2100 = vmatpush3.bf16.msra.mxu0 %v2183_v37 }
 0x336   :  { %v980_v52 = vadd.f32 %v2679_v38, %v979_v51  ;;  %2101 = vmatprep.subr.bf16.mxu0 %v2185_v0 }
 0x337   :  { %v1994_v53 = vpop.f32.mrf.mxu1 }
 0x338   :  { %v1073_v55 = vmax.f32 %v980_v52, 0.0 }
 0x339   :  { %v984_v57 = vpop.f32.mrf.mxu1  ;;  %2102 = vmatpush3.bf16.msra.mxu0 %v2184_v45 }
 0x33a   :  { %v1096_v58 = vpack.c.bf16 %v1073_v55, %v1072_v54  ;;  %v985_v60 = vadd.f32 %v2679_v38, %v984_v57 }
 0x33b   :  { %v1997_v59 = vpop.f32.mrf.mxu1 }
 0x33c   :  { %2052 = vmatmul.mubr.msk.bf16.gmra.mxu0 %vm894_vm5, %v1096_v58  ;;  %v1074_v1 = vmax.f32 %v985_v60, 0.0 }
 0x33d   :  { %v987_v61 = vpop.f32.mrf.mxu1  ;;  %2055 = vmatprep.mubr.msk.bf16.mxu0 %vm2187_vm2, %v2185_v0 }
 0x33e   :  { %v988_v62 = vadd.f32 %v2679_v38, %v987_v61 }
 0x33f   :  { %v1998_v63 = vpop.f32.mrf.mxu1 }
 0x340   :  { %v1075_v2 = vmax.f32 %v988_v62, 0.0 }
 0x341   :  { %v992_v3 = vpop.f32.mrf.mxu1 }
 0x342   :  { %v1097_v4 = vpack.c.bf16 %v1075_v2, %v1074_v1  ;;  %v993_v6 = vadd.f32 %v2679_v38, %v992_v3 }
 0x343   :  { %v2001_v5 = vpop.f32.mrf.mxu1 }
 0x344   :  { %2056 = vmatmul.mubr.msk.bf16.gmra.mxu0 %vm894_vm5, %v1097_v4  ;;  %v1076_v10 = vmax.f32 %v993_v6, 0.0 }
 0x345   :  { %v995_v7 = vpop.f32.mrf.mxu1  ;;  %2059 = vmatprep.mubr.msk.bf16.mxu0 %vm2187_vm2, %v2185_v0 }
 0x346   :  { %v996_v8 = vadd.f32 %v2679_v38, %v995_v7 }
 0x347   :  { %v2002_v9 = vpop.f32.mrf.mxu1 }
 0x348   :  { %v1077_v11 = vmax.f32 %v996_v8, 0.0 }
 0x349   :  { %v1000_v12 = vpop.f32.mrf.mxu1 }
 0x34a   :  { %v1098_v13 = vpack.c.bf16 %v1077_v11, %v1076_v10  ;;  %v1001_v15 = vadd.f32 %v2679_v38, %v1000_v12 }
 0x34b   :  { %v2005_v14 = vpop.f32.mrf.mxu1 }
 0x34c   :  { %2060 = vmatmul.mubr.msk.bf16.gmra.mxu0 %vm894_vm5, %v1098_v13  ;;  %v1078_v19 = vmax.f32 %v1001_v15, 0.0 }
 0x34d   :  { %v1003_v16 = vpop.f32.mrf.mxu1  ;;  %2063 = vmatprep.mubr.msk.bf16.mxu0 %vm2187_vm2, %v2185_v0 }
 0x34e   :  { %v1004_v17 = vadd.f32 %v2679_v38, %v1003_v16 }
 0x34f   :  { %v2006_v18 = vpop.f32.mrf.mxu1 }
 0x350   :  { %v1079_v20 = vmax.f32 %v1004_v17, 0.0 }
 0x351   :  { %v1008_v21 = vpop.f32.mrf.mxu1 }
 0x352   :  { %v1099_v22 = vpack.c.bf16 %v1079_v20, %v1078_v19  ;;  %v1009_v24 = vadd.f32 %v2679_v38, %v1008_v21 }
 0x353   :  { %v2009_v23 = vpop.f32.mrf.mxu1 }
 0x354   :  { %2064 = vmatmul.mubr.msk.bf16.gmra.mxu0 %vm894_vm5, %v1099_v22  ;;  %v1080_v28 = vmax.f32 %v1009_v24, 0.0 }
 0x355   :  { %v1011_v25 = vpop.f32.mrf.mxu1  ;;  %2067 = vmatprep.mubr.msk.bf16.mxu0 %vm2187_vm2, %v2185_v0 }
 0x356   :  { %v1012_v26 = vadd.f32 %v2679_v38, %v1011_v25 }
 0x357   :  { %v2010_v27 = vpop.f32.mrf.mxu1 }
 0x358   :  { %v1081_v29 = vmax.f32 %v1012_v26, 0.0 }
 0x359   :  { %v1016_v30 = vpop.f32.mrf.mxu1 }
 0x35a   :  { %v1100_v31 = vpack.c.bf16 %v1081_v29, %v1080_v28  ;;  %v1017_v33 = vadd.f32 %v2679_v38, %v1016_v30  ;;  %v2749_v30 = vld [vmem:[%s2952_s10] ss:$0 sm:$0xff] }
 0x35b   :  { %v2013_v32 = vpop.f32.mrf.mxu1 }
 0x35c   :  { %2068 = vmatmul.mubr.msk.bf16.gmra.mxu0 %vm894_vm5, %v1100_v31  ;;  %v1082_v37 = vmax.f32 %v1017_v33, 0.0 }
 0x35d   :  { %v1019_v34 = vpop.f32.mrf.mxu1  ;;  %2071 = vmatprep.mubr.msk.bf16.mxu0 %vm2187_vm2, %v2185_v0 }
 0x35e   :  { %v1020_v35 = vadd.f32 %v2679_v38, %v1019_v34 }
 0x35f   :  { %v2014_v36 = vpop.f32.mrf.mxu1 }
 0x360   :  { %v1083_v45 = vmax.f32 %v1020_v35, 0.0 }
 0x361   :  { %v1024_v39 = vpop.f32.mrf.mxu1 }
 0x362   :  { %v1101_v40 = vpack.c.bf16 %v1083_v45, %v1082_v37  ;;  %v1025_v42 = vadd.f32 %v2679_v38, %v1024_v39 }
 0x363   :  { %v2017_v41 = vpop.f32.mrf.mxu1 }
 0x364   :  { %2072 = vmatmul.mubr.msk.bf16.gmra.mxu0 %vm894_vm5, %v1101_v40  ;;  %v1084_v46 = vmax.f32 %v1025_v42, 0.0 }
 0x365   :  { %v1027_v50 = vpop.f32.mrf.mxu1  ;;  %2075 = vmatprep.mubr.msk.bf16.mxu0 %vm2187_vm2, %v2185_v0 }
 0x366   :  { %v1028_v43 = vadd.f32 %v2679_v38, %v1027_v50 }
 0x367   :  { %v2018_v44 = vpop.f32.mrf.mxu1 }
 0x368   :  { %v1085_v47 = vmax.f32 %v1028_v43, 0.0 }
 0x369   :  { %v1032_v56 = vpop.f32.mrf.mxu1 }
 0x36a   :  { %v1102_v48 = vpack.c.bf16 %v1085_v47, %v1084_v46  ;;  %v1033_v51 = vadd.f32 %v2679_v38, %v1032_v56 }
 0x36b   :  { %v2021_v49 = vpop.f32.mrf.mxu1 }
 0x36c   :  { %2076 = vmatmul.mubr.msk.bf16.gmra.mxu0 %vm894_vm5, %v1102_v48  ;;  %v1086_v55 = vmax.f32 %v1033_v51, 0.0 }
 0x36d   :  { %v1035_v52 = vpop.f32.mrf.mxu1  ;;  %2079 = vmatprep.mubr.msk.bf16.mxu0 %vm2187_vm2, %v2185_v0 }
 0x36e   :  { %v1036_v53 = vadd.f32 %v2679_v38, %v1035_v52 }
 0x36f   :  { %v2022_v54 = vpop.f32.mrf.mxu1 }
 0x370   :  { %v1087_v57 = vmax.f32 %v1036_v53, 0.0 }
 0x371   :  { %v1040_v58 = vpop.f32.mrf.mxu1 }
 0x372   :  { %v1103_v59 = vpack.c.bf16 %v1087_v57, %v1086_v55  ;;  %v1041_v61 = vadd.f32 %v2679_v38, %v1040_v58 }
 0x373   :  { %v2025_v60 = vpop.f32.mrf.mxu1 }
 0x374   :  { %2080 = vmatmul.mubr.msk.bf16.gmra.mxu0 %vm894_vm5, %v1103_v59  ;;  %v1088_v2 = vmax.f32 %v1041_v61, 0.0 }
 0x375   :  { %v1043_v62 = vpop.f32.mrf.mxu1  ;;  %2083 = vmatprep.mubr.msk.bf16.mxu0 %vm2187_vm2, %v2185_v0 }
 0x376   :  { %v1044_v63 = vadd.f32 %v2679_v38, %v1043_v62 }
 0x377   :  { %v2026_v1 = vpop.f32.mrf.mxu1 }
 0x378   :  { %v1089_v3 = vmax.f32 %v1044_v63, 0.0 }
 0x379   :  { %v1048_v4 = vpop.f32.mrf.mxu1 }
 0x37a   :  { %v1104_v5 = vpack.c.bf16 %v1089_v3, %v1088_v2  ;;  %v1049_v7 = vadd.f32 %v2679_v38, %v1048_v4 }
 0x37b   :  { %v2029_v6 = vpop.f32.mrf.mxu1 }
 0x37c   :  { %2084 = vmatmul.mubr.msk.bf16.gmra.mxu0 %vm894_vm5, %v1104_v5  ;;  %v1090_v11 = vmax.f32 %v1049_v7, 0.0 }
 0x37d   :  { %v1051_v8 = vpop.f32.mrf.mxu1  ;;  %2087 = vmatprep.mubr.msk.bf16.mxu0 %vm2187_vm2, %v2185_v0 }
 0x37e   :  { %v1052_v9 = vadd.f32 %v2679_v38, %v1051_v8 }
 0x37f   :  { %v2030_v10 = vpop.f32.mrf.mxu1 }
 0x380   :  { %v1091_v12 = vmax.f32 %v1052_v9, 0.0 }
 0x381   :  { %v1056_v13 = vpop.f32.mrf.mxu1 }
 0x382   :  { %v1105_v14 = vpack.c.bf16 %v1091_v12, %v1090_v11  ;;  %v1057_v16 = vadd.f32 %v2679_v38, %v1056_v13 }
 0x383   :  { %v2033_v15 = vpop.f32.mrf.mxu1 }
 0x384   :  { %2088 = vmatmul.mubr.msk.bf16.gmra.mxu0 %vm894_vm5, %v1105_v14  ;;  %v1092_v20 = vmax.f32 %v1057_v16, 0.0 }
 0x385   :  { %v1059_v17 = vpop.f32.mrf.mxu1  ;;  %2091 = vmatprep.mubr.msk.bf16.mxu0 %vm2187_vm2, %v2185_v0 }
 0x386   :  { %v1060_v18 = vadd.f32 %v2679_v38, %v1059_v17 }
 0x387   :  { %v2034_v19 = vpop.f32.mrf.mxu1 }
 0x388   :  { %v1093_v21 = vmax.f32 %v1060_v18, 0.0 }
 0x389   :  { %v1064_v22 = vpop.f32.mrf.mxu1 }
 0x38a   :  { %v1106_v23 = vpack.c.bf16 %v1093_v21, %v1092_v20  ;;  %v1065_v24 = vadd.f32 %v2679_v38, %v1064_v22 }
 0x38b   :  { %v2037_v25 = vpop.f32.mrf.mxu1 }
 0x38c   :  { %v1094_v26 = vmax.f32 %v1065_v24, 0.0  ;;  %2092 = vmatmul.mubr.msk.bf16.gmra.mxu0 %vm894_vm5, %v1106_v23 }
 0x38d   :  { %v1067_v27 = vpop.f32.mrf.mxu1  ;;  %2095 = vmatprep.mubr.msk.bf16.mxu0 %vm2187_vm2, %v2185_v0 }
 0x38e   :  { %v1107_v29 = vpack.c.bf16 %v1094_v26, %v1094_v26 }
 0x38f   :  { %v2038_v28 = vpop.f32.mrf.mxu1 }
 0x394   :  { %2096 = vmatmul.mubr.msk.bf16.gmra.mxu0 %vm894_vm5, %v1107_v29 }
 0x395   :  { %2103 = vmatprep.mubr.msk.bf16.mxu0 %vm2187_vm2, %v2185_v0 }
 0x3f4   :  { %v1220_v38 = vpop.f32.mrf.mxu0 }
 0x3f5   :  { %v1221_v32 = vadd.f32 %v2749_v30, %v1220_v38 }
 0x3f6   :  { %v2049_v31 = vpop.f32.mrf.mxu0 }
 0x3f7   :  { %v1322_v36 = vmax.f32 %v1221_v32, 0.0 }
 0x3f8   :  { %v1223_v33 = vpop.f32.mrf.mxu0 }
 0x3f9   :  { %v1224_v34 = vadd.f32 %v2749_v30, %v1223_v33 }
 0x3fa   :  { %v2050_v35 = vpop.f32.mrf.mxu0 }
 0x3fb   :  { %v1323_v37 = vmax.f32 %v1224_v34, 0.0 }
 0x3fc   :  { %v1228_v45 = vpop.f32.mrf.mxu0 }
 0x3fd   :  { %v1347_v39 = vpack.c.bf16 %v1323_v37, %v1322_v36  ;;  %v1229_v41 = vadd.f32 %v2749_v30, %v1228_v45 }
 0x3fe   :  { %v2053_v40 = vpop.f32.mrf.mxu0 }
 0x3ff   :  { %2104 = vmatmul.mubr.msk.bf16.vlgmr.msra.gmra.mxu0 %vm1383_vm6, %v1347_v39  ;;  %v1324_v44 = vmax.f32 %v1229_v41, 0.0 }
 0x400   :  { %v1231_v42 = vpop.f32.mrf.mxu0 }
 0x401   :  { %v1232_v50 = vadd.f32 %v2749_v30, %v1231_v42 }
 0x402   :  { %v2054_v43 = vpop.f32.mrf.mxu0 }
 0x403   :  { %v1325_v46 = vmax.f32 %v1232_v50, 0.0 }
 0x404   :  { %v1236_v47 = vpop.f32.mrf.mxu0 }
 0x405   :  { %v1348_v56 = vpack.c.bf16 %v1325_v46, %v1324_v44  ;;  %v1237_v49 = vadd.f32 %v2749_v30, %v1236_v47 }
 0x406   :  { %v2057_v48 = vpop.f32.mrf.mxu0 }
 0x407   :  { %2108 = vmatmul.mubr.msk.bf16.vlgmr.msra.gmra.mxu1 %vm1383_vm6, %v1348_v56  ;;  %v1326_v54 = vmax.f32 %v1237_v49, 0.0 }
 0x408   :  { %v1239_v51 = vpop.f32.mrf.mxu0  ;;  %2111 = vmatprep.mubr.msk.bf16.mxu1 %vm2187_vm2, %v2185_v0 }
 0x409   :  { %v1240_v52 = vadd.f32 %v2749_v30, %v1239_v51 }
 0x40a   :  { %v2058_v53 = vpop.f32.mrf.mxu0 }
 0x40b   :  { %v1327_v55 = vmax.f32 %v1240_v52, 0.0 }
 0x40c   :  { %v1244_v57 = vpop.f32.mrf.mxu0 }
 0x40d   :  { %v1349_v58 = vpack.c.bf16 %v1327_v55, %v1326_v54  ;;  %v1245_v60 = vadd.f32 %v2749_v30, %v1244_v57 }
 0x40e   :  { %v2061_v59 = vpop.f32.mrf.mxu0 }
 0x40f   :  { %2112 = vmatmul.mubr.msk.bf16.gmra.mxu1 %vm1383_vm6, %v1349_v58  ;;  %v1328_v1 = vmax.f32 %v1245_v60, 0.0 }
 0x410   :  { %v1247_v61 = vpop.f32.mrf.mxu0  ;;  %2115 = vmatprep.mubr.msk.bf16.mxu1 %vm2187_vm2, %v2185_v0 }
 0x411   :  { %v1248_v62 = vadd.f32 %v2749_v30, %v1247_v61 }
 0x412   :  { %v2062_v63 = vpop.f32.mrf.mxu0 }
 0x413   :  { %v1329_v2 = vmax.f32 %v1248_v62, 0.0 }
 0x414   :  { %v1252_v3 = vpop.f32.mrf.mxu0 }
 0x415   :  { %v1350_v4 = vpack.c.bf16 %v1329_v2, %v1328_v1  ;;  %v1253_v6 = vadd.f32 %v2749_v30, %v1252_v3 }
 0x416   :  { %v2065_v5 = vpop.f32.mrf.mxu0 }
 0x417   :  { %2116 = vmatmul.mubr.msk.bf16.gmra.mxu1 %vm1383_vm6, %v1350_v4  ;;  %v1330_v10 = vmax.f32 %v1253_v6, 0.0 }
 0x418   :  { %v1255_v7 = vpop.f32.mrf.mxu0  ;;  %2119 = vmatprep.mubr.msk.bf16.mxu1 %vm2187_vm2, %v2185_v0 }
 0x419   :  { %v1256_v8 = vadd.f32 %v2749_v30, %v1255_v7 }
 0x41a   :  { %v2066_v9 = vpop.f32.mrf.mxu0 }
 0x41b   :  { %v1331_v11 = vmax.f32 %v1256_v8, 0.0 }
 0x41c   :  { %v1260_v12 = vpop.f32.mrf.mxu0 }
 0x41d   :  { %v1351_v13 = vpack.c.bf16 %v1331_v11, %v1330_v10  ;;  %v1261_v15 = vadd.f32 %v2749_v30, %v1260_v12 }
 0x41e   :  { %v2069_v14 = vpop.f32.mrf.mxu0 }
 0x41f   :  { %2120 = vmatmul.mubr.msk.bf16.gmra.mxu1 %vm1383_vm6, %v1351_v13  ;;  %v1332_v19 = vmax.f32 %v1261_v15, 0.0 }
 0x420   :  { %v1263_v16 = vpop.f32.mrf.mxu0  ;;  %2123 = vmatprep.mubr.msk.bf16.mxu1 %vm2187_vm2, %v2185_v0 }
 0x421   :  { %v1264_v17 = vadd.f32 %v2749_v30, %v1263_v16 }
 0x422   :  { %v2070_v18 = vpop.f32.mrf.mxu0 }
 0x423   :  { %v1333_v20 = vmax.f32 %v1264_v17, 0.0 }
 0x424   :  { %v1268_v21 = vpop.f32.mrf.mxu0 }
 0x425   :  { %v1352_v22 = vpack.c.bf16 %v1333_v20, %v1332_v19  ;;  %v1269_v24 = vadd.f32 %v2749_v30, %v1268_v21  ;;  %v2814_v21 = vld [vmem:[%s2953_s12] ss:$0 sm:$0xff] }
 0x426   :  { %v2073_v23 = vpop.f32.mrf.mxu0 }
 0x427   :  { %2124 = vmatmul.mubr.msk.bf16.gmra.mxu1 %vm1383_vm6, %v1352_v22  ;;  %v1334_v28 = vmax.f32 %v1269_v24, 0.0 }
 0x428   :  { %v1271_v25 = vpop.f32.mrf.mxu0  ;;  %2127 = vmatprep.mubr.msk.bf16.mxu1 %vm2187_vm2, %v2185_v0 }
 0x429   :  { %v1272_v26 = vadd.f32 %v2749_v30, %v1271_v25 }
 0x42a   :  { %v2074_v27 = vpop.f32.mrf.mxu0 }
 0x42b   :  { %v1335_v29 = vmax.f32 %v1272_v26, 0.0 }
 0x42c   :  { %v1276_v38 = vpop.f32.mrf.mxu0 }
 0x42d   :  { %v1353_v31 = vpack.c.bf16 %v1335_v29, %v1334_v28  ;;  %v1277_v33 = vadd.f32 %v2749_v30, %v1276_v38 }
 0x42e   :  { %v2077_v32 = vpop.f32.mrf.mxu0 }
 0x42f   :  { %2128 = vmatmul.mubr.msk.bf16.gmra.mxu1 %vm1383_vm6, %v1353_v31  ;;  %v1336_v37 = vmax.f32 %v1277_v33, 0.0 }
 0x430   :  { %v1279_v34 = vpop.f32.mrf.mxu0  ;;  %2131 = vmatprep.mubr.msk.bf16.mxu1 %vm2187_vm2, %v2185_v0 }
 0x431   :  { %v1280_v35 = vadd.f32 %v2749_v30, %v1279_v34 }
 0x432   :  { %v2078_v36 = vpop.f32.mrf.mxu0 }
 0x433   :  { %v1337_v45 = vmax.f32 %v1280_v35, 0.0 }
 0x434   :  { %v1284_v39 = vpop.f32.mrf.mxu0 }
 0x435   :  { %v1354_v40 = vpack.c.bf16 %v1337_v45, %v1336_v37  ;;  %v1285_v42 = vadd.f32 %v2749_v30, %v1284_v39 }
 0x436   :  { %v2081_v41 = vpop.f32.mrf.mxu0 }
 0x437   :  { %2132 = vmatmul.mubr.msk.bf16.gmra.mxu1 %vm1383_vm6, %v1354_v40  ;;  %v1338_v46 = vmax.f32 %v1285_v42, 0.0 }
 0x438   :  { %v1287_v50 = vpop.f32.mrf.mxu0  ;;  %2135 = vmatprep.mubr.msk.bf16.mxu1 %vm2187_vm2, %v2185_v0 }
 0x439   :  { %v1288_v43 = vadd.f32 %v2749_v30, %v1287_v50 }
 0x43a   :  { %v2082_v44 = vpop.f32.mrf.mxu0 }
 0x43b   :  { %v1339_v47 = vmax.f32 %v1288_v43, 0.0 }
 0x43c   :  { %v1292_v56 = vpop.f32.mrf.mxu0 }
 0x43d   :  { %v1355_v48 = vpack.c.bf16 %v1339_v47, %v1338_v46  ;;  %v1293_v51 = vadd.f32 %v2749_v30, %v1292_v56 }
 0x43e   :  { %v2085_v49 = vpop.f32.mrf.mxu0 }
 0x43f   :  { %2136 = vmatmul.mubr.msk.bf16.gmra.mxu1 %vm1383_vm6, %v1355_v48  ;;  %v1340_v55 = vmax.f32 %v1293_v51, 0.0 }
 0x440   :  { %v1295_v52 = vpop.f32.mrf.mxu0  ;;  %2139 = vmatprep.mubr.msk.bf16.mxu1 %vm2187_vm2, %v2185_v0 }
 0x441   :  { %v1296_v53 = vadd.f32 %v2749_v30, %v1295_v52 }
 0x442   :  { %v2086_v54 = vpop.f32.mrf.mxu0 }
 0x443   :  { %v1341_v57 = vmax.f32 %v1296_v53, 0.0 }
 0x444   :  { %v1300_v58 = vpop.f32.mrf.mxu0 }
 0x445   :  { %v1356_v59 = vpack.c.bf16 %v1341_v57, %v1340_v55  ;;  %v1301_v61 = vadd.f32 %v2749_v30, %v1300_v58 }
 0x446   :  { %v2089_v60 = vpop.f32.mrf.mxu0 }
 0x447   :  { %2140 = vmatmul.mubr.msk.bf16.gmra.mxu1 %vm1383_vm6, %v1356_v59  ;;  %v1342_v2 = vmax.f32 %v1301_v61, 0.0 }
 0x448   :  { %v1303_v62 = vpop.f32.mrf.mxu0  ;;  %2143 = vmatprep.mubr.msk.bf16.mxu1 %vm2187_vm2, %v2185_v0 }
 0x449   :  { %v1304_v63 = vadd.f32 %v2749_v30, %v1303_v62 }
 0x44a   :  { %v2090_v1 = vpop.f32.mrf.mxu0 }
 0x44b   :  { %v1343_v3 = vmax.f32 %v1304_v63, 0.0 }
 0x44c   :  { %v1308_v4 = vpop.f32.mrf.mxu0 }
 0x44d   :  { %v1357_v5 = vpack.c.bf16 %v1343_v3, %v1342_v2  ;;  %v1309_v7 = vadd.f32 %v2749_v30, %v1308_v4 }
 0x44e   :  { %v2093_v6 = vpop.f32.mrf.mxu0 }
 0x44f   :  { %2144 = vmatmul.mubr.msk.bf16.gmra.mxu1 %vm1383_vm6, %v1357_v5  ;;  %v1344_v11 = vmax.f32 %v1309_v7, 0.0 }
 0x450   :  { %v1311_v8 = vpop.f32.mrf.mxu0  ;;  %2147 = vmatprep.mubr.msk.bf16.mxu1 %vm2187_vm2, %v2185_v0 }
 0x451   :  { %v1312_v9 = vadd.f32 %v2749_v30, %v1311_v8 }
 0x452   :  { %v2094_v10 = vpop.f32.mrf.mxu0 }
 0x453   :  { %v1345_v12 = vmax.f32 %v1312_v9, 0.0 }
 0x454   :  { %v1316_v13 = vpop.f32.mrf.mxu0 }
 0x455   :  { %v1358_v14 = vpack.c.bf16 %v1345_v12, %v1344_v11  ;;  %v1317_v15 = vadd.f32 %v2749_v30, %v1316_v13 }
 0x456   :  { %v2097_v16 = vpop.f32.mrf.mxu0 }
 0x457   :  { %v1346_v17 = vmax.f32 %v1317_v15, 0.0  ;;  %2148 = vmatmul.mubr.msk.bf16.gmra.mxu1 %vm1383_vm6, %v1358_v14 }
 0x458   :  { %v1319_v18 = vpop.f32.mrf.mxu0  ;;  %2151 = vmatprep.mubr.msk.bf16.mxu1 %vm2187_vm2, %v2185_v0 }
 0x459   :  { %v1359_v20 = vpack.c.bf16 %v1346_v17, %v1346_v17 }
 0x45a   :  { %v2098_v19 = vpop.f32.mrf.mxu0 }
 0x45f   :  { %2152 = vmatmul.mubr.msk.bf16.gmra.mxu1 %vm1383_vm6, %v1359_v20 }
 0x4bf   :  { %v1457_v22 = vpop.f32.mrf.mxu0 }
 0x4c0   :  { %v1458_v30 = vadd.f32 %v2814_v21, %v1457_v22 }
 0x4c1   :  { %v2105_v23 = vpop.f32.mrf.mxu0 }
 0x4c2   :  { %1560 = vst.msk [vmem:[%s2954_s13] sm:$0xff] %vm1559_vm7, %v1458_v30 }
 0x4c3   :  { %v1460_v0 = vpop.f32.mrf.mxu0 }
 0x4c4   :  { %v1461_v24 = vadd.f32 %v2814_v21, %v1460_v0 }
 0x4c5   :  { %v2106_v25 = vpop.f32.mrf.mxu0 }
 0x4c6   :  { %1561 = vst.msk [vmem:[%s2954_s13 + $0x8] sm:$0xff] %vm1559_vm7, %v1461_v24 }
 0x4c7   :  { %v1465_v26 = vpop.f32.mrf.mxu1 }
 0x4c8   :  { %v1466_v27 = vadd.f32 %v2814_v21, %v1465_v26 }
 0x4c9   :  { %v2109_v28 = vpop.f32.mrf.mxu1 }
 0x4ca   :  { %1562 = vst.msk [vmem:[%s2954_s13 + $0x10] sm:$0xff] %vm1559_vm7, %v1466_v27 }
 0x4cb   :  { %v1468_v29 = vpop.f32.mrf.mxu1 }
 0x4cc   :  { %v1469_v38 = vadd.f32 %v2814_v21, %v1468_v29 }
 0x4cd   :  { %v2110_v31 = vpop.f32.mrf.mxu1 }
 0x4ce   :  { %1563 = vst.msk [vmem:[%s2954_s13 + $0x18] sm:$0xff] %vm1559_vm7, %v1469_v38 }
 0x4cf   :  { %v1473_v32 = vpop.f32.mrf.mxu1 }
 0x4d0   :  { %v1474_v33 = vadd.f32 %v2814_v21, %v1473_v32 }
 0x4d1   :  { %v2113_v34 = vpop.f32.mrf.mxu1 }
 0x4d2   :  { %1564 = vst.msk [vmem:[%s2954_s13 + $0x20] sm:$0xff] %vm1559_vm7, %v1474_v33 }
 0x4d3   :  { %v1476_v35 = vpop.f32.mrf.mxu1 }
 0x4d4   :  { %v1477_v36 = vadd.f32 %v2814_v21, %v1476_v35 }
 0x4d5   :  { %v2114_v37 = vpop.f32.mrf.mxu1 }
 0x4d6   :  { %1565 = vst.msk [vmem:[%s2954_s13 + $0x28] sm:$0xff] %vm1559_vm7, %v1477_v36 }
 0x4d7   :  { %v1481_v45 = vpop.f32.mrf.mxu1 }
 0x4d8   :  { %v1482_v39 = vadd.f32 %v2814_v21, %v1481_v45 }
 0x4d9   :  { %v2117_v40 = vpop.f32.mrf.mxu1 }
 0x4da   :  { %1566 = vst.msk [vmem:[%s2954_s13 + $0x30] sm:$0xff] %vm1559_vm7, %v1482_v39 }
 0x4db   :  { %v1484_v41 = vpop.f32.mrf.mxu1 }
 0x4dc   :  { %v1485_v42 = vadd.f32 %v2814_v21, %v1484_v41 }
 0x4dd   :  { %v2118_v50 = vpop.f32.mrf.mxu1 }
 0x4de   :  { %1567 = vst.msk [vmem:[%s2954_s13 + $0x38] sm:$0xff] %vm1559_vm7, %v1485_v42 }
 0x4df   :  { %v1489_v43 = vpop.f32.mrf.mxu1 }
 0x4e0   :  { %v1490_v44 = vadd.f32 %v2814_v21, %v1489_v43 }
 0x4e1   :  { %v2121_v46 = vpop.f32.mrf.mxu1 }
 0x4e2   :  { %1568 = vst.msk [vmem:[%s2954_s13 + $0x40] sm:$0xff] %vm1559_vm7, %v1490_v44 }
 0x4e3   :  { %v1492_v47 = vpop.f32.mrf.mxu1 }
 0x4e4   :  { %v1493_v56 = vadd.f32 %v2814_v21, %v1492_v47 }
 0x4e5   :  { %v2122_v48 = vpop.f32.mrf.mxu1 }
 0x4e6   :  { %1569 = vst.msk [vmem:[%s2954_s13 + $0x48] sm:$0xff] %vm1559_vm7, %v1493_v56 }
 0x4e7   :  { %v1497_v49 = vpop.f32.mrf.mxu1 }
 0x4e8   :  { %v1498_v51 = vadd.f32 %v2814_v21, %v1497_v49 }
 0x4e9   :  { %v2125_v52 = vpop.f32.mrf.mxu1 }
 0x4ea   :  { %1570 = vst.msk [vmem:[%s2954_s13 + $0x50] sm:$0xff] %vm1559_vm7, %v1498_v51 }
 0x4eb   :  { %v1500_v53 = vpop.f32.mrf.mxu1 }
 0x4ec   :  { %v1501_v54 = vadd.f32 %v2814_v21, %v1500_v53 }
 0x4ed   :  { %v2126_v55 = vpop.f32.mrf.mxu1 }
 0x4ee   :  { %1571 = vst.msk [vmem:[%s2954_s13 + $0x58] sm:$0xff] %vm1559_vm7, %v1501_v54 }
 0x4ef   :  { %v1505_v57 = vpop.f32.mrf.mxu1 }
 0x4f0   :  { %v1506_v58 = vadd.f32 %v2814_v21, %v1505_v57 }
 0x4f1   :  { %v2129_v59 = vpop.f32.mrf.mxu1 }
 0x4f2   :  { %1572 = vst.msk [vmem:[%s2954_s13 + $0x60] sm:$0xff] %vm1559_vm7, %v1506_v58 }
 0x4f3   :  { %v1508_v60 = vpop.f32.mrf.mxu1 }
 0x4f4   :  { %v1509_v61 = vadd.f32 %v2814_v21, %v1508_v60 }
 0x4f5   :  { %v2130_v62 = vpop.f32.mrf.mxu1 }
 0x4f6   :  { %1573 = vst.msk [vmem:[%s2954_s13 + $0x68] sm:$0xff] %vm1559_vm7, %v1509_v61 }
 0x4f7   :  { %v1513_v63 = vpop.f32.mrf.mxu1 }
 0x4f8   :  { %v1514_v1 = vadd.f32 %v2814_v21, %v1513_v63 }
 0x4f9   :  { %v2133_v2 = vpop.f32.mrf.mxu1 }
 0x4fa   :  { %1574 = vst.msk [vmem:[%s2954_s13 + $0x70] sm:$0xff] %vm1559_vm7, %v1514_v1 }
 0x4fb   :  { %v1516_v3 = vpop.f32.mrf.mxu1 }
 0x4fc   :  { %v1517_v4 = vadd.f32 %v2814_v21, %v1516_v3 }
 0x4fd   :  { %v2134_v5 = vpop.f32.mrf.mxu1 }
 0x4fe   :  { %1575 = vst.msk [vmem:[%s2954_s13 + $0x78] sm:$0xff] %vm1559_vm7, %v1517_v4 }
 0x4ff   :  { %v1521_v6 = vpop.f32.mrf.mxu1 }
 0x500   :  { %v1522_v7 = vadd.f32 %v2814_v21, %v1521_v6 }
 0x501   :  { %v2137_v8 = vpop.f32.mrf.mxu1 }
 0x502   :  { %1576 = vst.msk [vmem:[%s2954_s13 + $0x80] sm:$0xff] %vm1559_vm7, %v1522_v7 }
 0x503   :  { %v1524_v9 = vpop.f32.mrf.mxu1 }
 0x504   :  { %v1525_v10 = vadd.f32 %v2814_v21, %v1524_v9 }
 0x505   :  { %v2138_v11 = vpop.f32.mrf.mxu1 }
 0x506   :  { %1577 = vst.msk [vmem:[%s2954_s13 + $0x88] sm:$0xff] %vm1559_vm7, %v1525_v10 }
 0x507   :  { %v1529_v12 = vpop.f32.mrf.mxu1 }
 0x508   :  { %v1530_v13 = vadd.f32 %v2814_v21, %v1529_v12 }
 0x509   :  { %v2141_v14 = vpop.f32.mrf.mxu1 }
 0x50a   :  { %1578 = vst.msk [vmem:[%s2954_s13 + $0x90] sm:$0xff] %vm1559_vm7, %v1530_v13 }
 0x50b   :  { %v1532_v15 = vpop.f32.mrf.mxu1 }
 0x50c   :  { %v1533_v16 = vadd.f32 %v2814_v21, %v1532_v15 }
 0x50d   :  { %v2142_v17 = vpop.f32.mrf.mxu1 }
 0x50e   :  { %1579 = vst.msk [vmem:[%s2954_s13 + $0x98] sm:$0xff] %vm1559_vm7, %v1533_v16 }
 0x50f   :  { %v1537_v18 = vpop.f32.mrf.mxu1 }
 0x510   :  { %v1538_v19 = vadd.f32 %v2814_v21, %v1537_v18 }
 0x511   :  { %v2145_v20 = vpop.f32.mrf.mxu1 }
 0x512   :  { %1580 = vst.msk [vmem:[%s2954_s13 + $0xa0] sm:$0xff] %vm1559_vm7, %v1538_v19 }
 0x513   :  { %v1540_v22 = vpop.f32.mrf.mxu1 }
 0x514   :  { %v1541_v30 = vadd.f32 %v2814_v21, %v1540_v22 }
 0x515   :  { %v2146_v23 = vpop.f32.mrf.mxu1 }
 0x516   :  { %1581 = vst.msk [vmem:[%s2954_s13 + $0xa8] sm:$0xff] %vm1559_vm7, %v1541_v30 }
 0x517   :  { %v1545_v0 = vpop.f32.mrf.mxu1 }
 0x518   :  { %v1546_v24 = vadd.f32 %v2814_v21, %v1545_v0 }
 0x519   :  { %v2149_v25 = vpop.f32.mrf.mxu1 }
 0x51a   :  { %1582 = vst.msk [vmem:[%s2954_s13 + $0xb0] sm:$0xff] %vm1559_vm7, %v1546_v24 }
 0x51b   :  { %v1548_v26 = vpop.f32.mrf.mxu1 }
 0x51c   :  { %v1549_v27 = vadd.f32 %v2814_v21, %v1548_v26 }
 0x51d   :  { %v2150_v28 = vpop.f32.mrf.mxu1 }
 0x51e   :  { %1583 = vst.msk [vmem:[%s2954_s13 + $0xb8] sm:$0xff] %vm1559_vm7, %v1549_v27 }
 0x51f   :  { %v1553_v29 = vpop.f32.mrf.mxu1 }
 0x520   :  { %v1554_v38 = vadd.f32 %v2814_v21, %v1553_v29 }
 0x521   :  { %v2153_v31 = vpop.f32.mrf.mxu1 }
 0x522   :  { %1584 = vst.msk [vmem:[%s2954_s13 + $0xc0] sm:$0xff] %vm1559_vm7, %v1554_v38 }
 0x523   :  { %v1556_v32 = vpop.f32.mrf.mxu1 }
 0x525   :  { %v2154_v33 = vpop.f32.mrf.mxu1 }

</bundles_post_ra>
